<compile_context>
chip_gen: v7x
topology: tpu7x:2x2x1
jax: 0.10.0
libtpu: 0.0.40
codegen_flags: <defaults>
</compile_context>

<pallas_src>
import jax
import jax.numpy as jnp
from jax import lax
from jax.experimental import pallas as pl
from jax.experimental.pallas import tpu as pltpu


def _round_up(a, b):
    return (a + b - 1) // b * b


def _laplace_terms(x):
    """x: (H, W, NB) f32 block of feature maps (maps on the lane axis).

    Returns (y_in, y_l, y_r) for the 3x3 Laplace [[0,-1,0],[-1,4,-1],[0,-1,0]]
    with zero ("same") padding:
      y_in : response on interior columns 1..W-2, shape (H, W-2, NB)
      y_l  : response on column 0,               shape (H, 1, NB)
      y_r  : response on column W-1,             shape (H, 1, NB)
    Row neighbours use leading-axis concatenation (pure address offsets);
    column neighbours use static slices of values only, so nothing requires
    sublane-offset stores or cross-lane data movement.
    """
    H, W, _ = x.shape
    zr = jnp.zeros_like(x[:1])                       # (1, W, NB)
    up = jnp.concatenate([zr, x[:-1]], axis=0)       # x[i-1, j], zero at i=0
    dn = jnp.concatenate([x[1:], zr], axis=0)        # x[i+1, j], zero at i=H-1
    t = 4.0 * x - up - dn                            # vertical part applied
    y_in = t[:, 1:W - 1, :] - x[:, :W - 2, :] - x[:, 2:, :]
    y_l = t[:, :1, :] - x[:, 1:2, :]                 # x[:, -1] == 0
    y_r = t[:, W - 1:, :] - x[:, W - 2:W - 1, :]     # x[:,  W] == 0
    return y_in, y_l, y_r


def _make_kernels(inv_scale):
    """Build the three kernel variants, closing over the final scale factor."""

    def _init(i, acc_ref):
        @pl.when(i == 0)
        def _():
            acc_ref[...] = jnp.zeros_like(acc_ref)

    def _finish(i, out_ref, acc_ref):
        @pl.when(i == pl.num_programs(0) - 1)
        def _():
            # single cross-lane/cross-sublane reduce, scale folded in.
            out_ref[0, 0] = jnp.sum(acc_ref[...]) * inv_scale

    def kernel_plain(x_ref, out_ref, acc_ref):
        i = pl.program_id(0)
        _init(i, acc_ref)
        x = x_ref[...].astype(jnp.float32)           # single upcast on load
        y_in, y_l, y_r = _laplace_terms(x)
        acc_ref[...] += jnp.sum(y_in * y_in, axis=0)                 # VPU adds
        acc_ref[:1, :] = acc_ref[:1, :] + jnp.sum(y_l * y_l + y_r * y_r, axis=0)
        _finish(i, out_ref, acc_ref)

    def kernel_lane_w(x_ref, w_ref, out_ref, acc_ref):
        i = pl.program_id(0)
        _init(i, acc_ref)
        x = x_ref[...].astype(jnp.float32)
        w = w_ref[...].astype(jnp.float32)           # (1, NB) per-map weights
        y_in, y_l, y_r = _laplace_terms(x)
        acc_ref[...] += jnp.sum(y_in * y_in, axis=0) * w
        acc_ref[:1, :] = acc_ref[:1, :] + jnp.sum(y_l * y_l + y_r * y_r, axis=0) * w
        _finish(i, out_ref, acc_ref)

    def kernel_full_w(x_ref, w_ref, out_ref, acc_ref):
        i = pl.program_id(0)
        _init(i, acc_ref)
        x = x_ref[...].astype(jnp.float32)
        w = w_ref[...].astype(jnp.float32)           # (H, W, NB) general weights
        W = x.shape[1]
        y_in, y_l, y_r = _laplace_terms(x)
        acc_ref[...] += jnp.sum(y_in * y_in * w[:, 1:W - 1, :], axis=0)
        acc_ref[:1, :] = acc_ref[:1, :] + jnp.sum(
            y_l * y_l * w[:, :1, :] + y_r * y_r * w[:, W - 1:, :], axis=0)
        _finish(i, out_ref, acc_ref)

    return kernel_plain, kernel_lane_w, kernel_full_w


def laplace_l2(x, weights=None, *, block_lanes=None, block_bytes=4 * 1024 * 1024):
    """Pallas TPU LaplaceL2.forward:  mean(laplace(x)**2 * weights) / 2."""
    ic, oc, k1, k2 = x.shape
    n = ic * oc
    H, W = k1, k2
    # TODO(synk): spatial kernels smaller than 3x3 are not handled by the
    # split-boundary formulation (irrelevant for conv-weight regularization).
    assert H >= 3 and W >= 3, "laplace_l2 requires k1, k2 >= 3"
    inv_scale = 1.0 / (2.0 * n * k1 * k2)

    # ---- lane-dense layout: N = ic*oc on the 128-lane axis -----------------
    n128 = _round_up(n, 128)
    if block_lanes is None:
        cap = max(128, (block_bytes // (H * W * 4)) // 128 * 128)
    else:
        cap = max(128, _round_up(block_lanes, 128))
    num_blocks = -(-n128 // cap)                        # cdiv
    nb = _round_up(-(-n128 // num_blocks), 128)         # balanced lane blocks
    n_pad = nb * num_blocks
    grid = (num_blocks,)

    # layout plumbing only: one relayout copy (H, W, N); padded maps are zero
    # and contribute nothing to the sum.
    xt = jnp.transpose(x.reshape(n, H, W), (1, 2, 0))
    if n_pad != n:
        xt = jnp.pad(xt, ((0, 0), (0, 0), (0, n_pad - n)))

    kernel_plain, kernel_lane_w, kernel_full_w = _make_kernels(inv_scale)

    x_spec = pl.BlockSpec((H, W, nb), lambda i: (0, 0, i))
    out_spec = pl.BlockSpec(memory_space=pltpu.MemorySpace.SMEM)
    out_shape = jax.ShapeDtypeStruct((1, 1), jnp.float32)
    scratch = [pltpu.VMEM((W - 2, nb), jnp.float32)]    # partial-sum accumulator
    cparams = pltpu.CompilerParams(
        dimension_semantics=("arbitrary",),             # accumulator over N-blocks
        vmem_limit_bytes=32 * 1024 * 1024,
    )

    if weights is None:
        total = pl.pallas_call(
            kernel_plain, out_shape=out_shape, grid=grid,
            in_specs=[x_spec], out_specs=out_spec,
            scratch_shapes=scratch, compiler_params=cparams,
        )(xt)
        return total[0, 0]

    w = jnp.asarray(weights)
    w4 = w.reshape((1,) * (4 - w.ndim) + w.shape)
    if w4.shape[2] == 1 and w4.shape[3] == 1:
        # per-feature-map weight -> one scalar per lane; never materialize or
        # DMA a full-size weight tensor.
        w_lane = jnp.broadcast_to(w4[:, :, 0, 0], (ic, oc)).reshape(1, n)
        if n_pad != n:
            w_lane = jnp.pad(w_lane, ((0, 0), (0, n_pad - n)))
        w_spec = pl.BlockSpec((1, nb), lambda i: (0, i))
        total = pl.pallas_call(
            kernel_lane_w, out_shape=out_shape, grid=grid,
            in_specs=[x_spec, w_spec], out_specs=out_spec,
            scratch_shapes=scratch, compiler_params=cparams,
        )(xt, w_lane)
        return total[0, 0]

    # fully general per-element weights: same lane-dense layout as x.
    wt = jnp.transpose(jnp.broadcast_to(w4, (ic, oc, k1, k2)).reshape(n, H, W),
                       (1, 2, 0))
    if n_pad != n:
        wt = jnp.pad(wt, ((0, 0), (0, 0), (0, n_pad - n)))
    w_spec = pl.BlockSpec((H, W, nb), lambda i: (0, 0, i))
    total = pl.pallas_call(
        kernel_full_w, out_shape=out_shape, grid=grid,
        in_specs=[x_spec, w_spec], out_specs=out_spec,
        scratch_shapes=scratch, compiler_params=cparams,
    )(xt, wt)
    return total[0, 0]


def _laplace_l2_ref(x, weights=None):
    """Pure-JAX reference (lax.conv, full f32) for correctness checking."""
    ic, oc, k1, k2 = x.shape
    filt = jnp.array([[0.0, -1.0, 0.0],
                      [-1.0, 4.0, -1.0],
                      [0.0, -1.0, 0.0]], jnp.float32)[None, None]
    xr = x.reshape(ic * oc, 1, k1, k2).astype(jnp.float32)
    y = lax.conv_general_dilated(xr, filt, (1, 1), ((1, 1), (1, 1)),
                                 precision=lax.Precision.HIGHEST)
    y = y.reshape(ic, oc, k1, k2)
    w = 1.0 if weights is None else jnp.asarray(weights, jnp.float32)
    return jnp.mean(y ** 2 * w) / 2.0


if __name__ == "__main__":
    key = jax.random.PRNGKey(0)
    k_x, k_w1, k_w2, k_x2 = jax.random.split(key, 4)

    ic, oc, k1, k2 = 16, 32, 9, 9          # n = 512 maps -> fills the lane axis
    x = jax.random.normal(k_x, (ic, oc, k1, k2), dtype=jnp.float32)
    ref = jax.block_until_ready(_laplace_l2_ref(x))

    # unweighted, single lane-block
    out = jax.block_until_ready(laplace_l2(x))
    assert jnp.allclose(out, ref, rtol=1e-5, atol=1e-5), (out, ref)

    # unweighted, multi-step grid (exercises the accumulator / pipelining path)
    out_g = jax.block_until_ready(laplace_l2(x, block_lanes=128))
    assert jnp.allclose(out_g, ref, rtol=1e-5, atol=1e-5), (out_g, ref)

    # per-feature-map weights (ic, oc, 1, 1) -> per-lane fast path
    w_map = jnp.abs(jax.random.normal(k_w1, (ic, oc, 1, 1), dtype=jnp.float32))
    out_w = jax.block_until_ready(laplace_l2(x, w_map))
    ref_w = jax.block_until_ready(_laplace_l2_ref(x, w_map))
    assert jnp.allclose(out_w, ref_w, rtol=1e-5, atol=1e-5), (out_w, ref_w)

    # fully general per-element weights
    w_full = jnp.abs(jax.random.normal(k_w2, (ic, oc, k1, k2), dtype=jnp.float32))
    out_wf = jax.block_until_ready(laplace_l2(x, w_full))
    ref_wf = jax.block_until_ready(_laplace_l2_ref(x, w_full))
    assert jnp.allclose(out_wf, ref_wf, rtol=1e-5, atol=1e-5), (out_wf, ref_wf)

    # N not a multiple of 128 (lane-padding path) + non-square spatial kernel
    x2 = jax.random.normal(k_x2, (3, 5, 7, 5), dtype=jnp.float32)
    out2 = jax.block_until_ready(laplace_l2(x2))
    ref2 = jax.block_until_ready(_laplace_l2_ref(x2))
    assert jnp.allclose(out2, ref2, rtol=1e-5, atol=1e-5), (out2, ref2)

    print("KERNEL_OK")
</pallas_src>

<mosaic_0001>
module attributes {stable_mosaic.version = 11 : i64} {
  func.func @kernel_plain(%arg0: i32, %arg1: memref<9x9x512xf32, #tpu.memory_space<vmem>>, %arg2: memref<1x1xf32, #tpu.memory_space<smem>>, %arg3: memref<7x512xf32, #tpu.memory_space<vmem>>) attributes {dimension_semantics = [#tpu.dimension_semantics<arbitrary>], iteration_bounds = array<i64: 1>, scalar_prefetch = 0 : i64, scratch_operands = 1 : i64, tpu.core_type = #tpu.core_type<tc>, window_params = [{transform_indices = @transform_0, window_bounds = array<i64: 9, 9, 512>}, {transform_indices = @transform_1, window_bounds = array<i64: 1, 1>}]} {
    %c0_i32 = arith.constant 0 : i32
    %0 = arith.cmpi eq, %arg0, %c0_i32 : i32
    %1 = arith.extui %0 : i1 to i32
    %c0_i32_0 = arith.constant 0 : i32
    %2 = arith.cmpi ne, %1, %c0_i32_0 : i32
    scf.if %2 {
      %cst_16 = arith.constant 0.000000e+00 : f32
      %39 = vector.broadcast %cst_16 : f32 to vector<7x512xf32>
      %c0_17 = arith.constant 0 : index
      %c0_18 = arith.constant 0 : index
      %40 = vector.load %arg3[%c0_17, %c0_18] : memref<7x512xf32, #tpu.memory_space<vmem>>, vector<7x512xf32>
      tpu.vector_store %arg3[%c0_17, %c0_18], %39 {strides = array<i32>} : memref<7x512xf32, #tpu.memory_space<vmem>>, vector<7x512xf32>,
    } else {
    }
    %c0 = arith.constant 0 : index
    %c0_1 = arith.constant 0 : index
    %c0_2 = arith.constant 0 : index
    %3 = vector.load %arg1[%c0, %c0_1, %c0_2] : memref<9x9x512xf32, #tpu.memory_space<vmem>>, vector<9x9x512xf32>
    %cst = arith.constant 0.000000e+00 : f32
    %4 = vector.broadcast %cst : f32 to vector<1x9x512xf32>
    %5 = vector.extract_strided_slice %3 {offsets = [0, 0, 0], sizes = [8, 9, 512], strides = [1, 1, 1]} : vector<9x9x512xf32> to vector<8x9x512xf32>
    %6 = tpu.concatenate %4, %5 in 0 : vector<1x9x512xf32>, vector<8x9x512xf32> -> vector<9x9x512xf32>
    %7 = vector.extract_strided_slice %3 {offsets = [1, 0, 0], sizes = [8, 9, 512], strides = [1, 1, 1]} : vector<9x9x512xf32> to vector<8x9x512xf32>
    %8 = tpu.concatenate %7, %4 in 0 : vector<8x9x512xf32>, vector<1x9x512xf32> -> vector<9x9x512xf32>
    %cst_3 = arith.constant 4.000000e+00 : f32
    %9 = vector.broadcast %cst_3 : f32 to vector<9x9x512xf32>
    %10 = arith.mulf %9, %3 : vector<9x9x512xf32>
    %11 = arith.subf %10, %6 : vector<9x9x512xf32>
    %12 = arith.subf %11, %8 : vector<9x9x512xf32>
    %13 = vector.extract_strided_slice %12 {offsets = [0, 1, 0], sizes = [9, 7, 512], strides = [1, 1, 1]} : vector<9x9x512xf32> to vector<9x7x512xf32>
    %14 = vector.extract_strided_slice %3 {offsets = [0, 0, 0], sizes = [9, 7, 512], strides = [1, 1, 1]} : vector<9x9x512xf32> to vector<9x7x512xf32>
    %15 = arith.subf %13, %14 : vector<9x7x512xf32>
    %16 = vector.extract_strided_slice %3 {offsets = [0, 2, 0], sizes = [9, 7, 512], strides = [1, 1, 1]} : vector<9x9x512xf32> to vector<9x7x512xf32>
    %17 = arith.subf %15, %16 : vector<9x7x512xf32>
    %18 = vector.extract_strided_slice %12 {offsets = [0, 0, 0], sizes = [9, 1, 512], strides = [1, 1, 1]} : vector<9x9x512xf32> to vector<9x1x512xf32>
    %19 = vector.extract_strided_slice %3 {offsets = [0, 1, 0], sizes = [9, 1, 512], strides = [1, 1, 1]} : vector<9x9x512xf32> to vector<9x1x512xf32>
    %20 = arith.subf %18, %19 : vector<9x1x512xf32>
    %21 = vector.extract_strided_slice %12 {offsets = [0, 8, 0], sizes = [9, 1, 512], strides = [1, 1, 1]} : vector<9x9x512xf32> to vector<9x1x512xf32>
    %22 = vector.extract_strided_slice %3 {offsets = [0, 7, 0], sizes = [9, 1, 512], strides = [1, 1, 1]} : vector<9x9x512xf32> to vector<9x1x512xf32>
    %23 = arith.subf %21, %22 : vector<9x1x512xf32>
    %c0_4 = arith.constant 0 : index
    %c0_5 = arith.constant 0 : index
    %24 = vector.load %arg3[%c0_4, %c0_5] : memref<7x512xf32, #tpu.memory_space<vmem>>, vector<7x512xf32>
    %25 = arith.mulf %17, %17 : vector<9x7x512xf32>
    %cst_6 = arith.constant dense<0.000000e+00> : vector<7x512xf32>
    %26 = vector.multi_reduction <add>, %25, %cst_6 [0] : vector<9x7x512xf32> to vector<7x512xf32>
    %27 = arith.addf %24, %26 : vector<7x512xf32>
    %c0_7 = arith.constant 0 : index
    %c0_8 = arith.constant 0 : index
    %28 = vector.load %arg3[%c0_7, %c0_8] : memref<7x512xf32, #tpu.memory_space<vmem>>, vector<7x512xf32>
    tpu.vector_store %arg3[%c0_7, %c0_8], %27 {strides = array<i32>} : memref<7x512xf32, #tpu.memory_space<vmem>>, vector<7x512xf32>,
    %c0_9 = arith.constant 0 : index
    %c0_10 = arith.constant 0 : index
    %29 = vector.load %arg3[%c0_9, %c0_10] : memref<7x512xf32, #tpu.memory_space<vmem>>, vector<1x512xf32>
    %30 = arith.mulf %20, %20 : vector<9x1x512xf32>
    %31 = arith.mulf %23, %23 : vector<9x1x512xf32>
    %32 = arith.addf %30, %31 : vector<9x1x512xf32>
    %cst_11 = arith.constant dense<0.000000e+00> : vector<1x512xf32>
    %33 = vector.multi_reduction <add>, %32, %cst_11 [0] : vector<9x1x512xf32> to vector<1x512xf32>
    %34 = arith.addf %29, %33 : vector<1x512xf32>
    %c0_12 = arith.constant 0 : index
    %c0_13 = arith.constant 0 : index
    %35 = vector.load %arg3[%c0_12, %c0_13] : memref<7x512xf32, #tpu.memory_space<vmem>>, vector<1x512xf32>
    tpu.vector_store %arg3[%c0_12, %c0_13], %34 {strides = array<i32>} : memref<7x512xf32, #tpu.memory_space<vmem>>, vector<1x512xf32>,
    %c0_i32_14 = arith.constant 0 : i32
    %36 = arith.cmpi eq, %arg0, %c0_i32_14 : i32
    %37 = arith.extui %36 : i1 to i32
    %c0_i32_15 = arith.constant 0 : i32
    %38 = arith.cmpi ne, %37, %c0_i32_15 : i32
    scf.if %38 {
      %c0_16 = arith.constant 0 : index
      %c0_17 = arith.constant 0 : index
      %39 = vector.load %arg3[%c0_16, %c0_17] : memref<7x512xf32, #tpu.memory_space<vmem>>, vector<7x512xf32>
      %40 = vector.shape_cast %39 : vector<7x512xf32> to vector<1x7x512xf32>
      %cst_18 = arith.constant dense<0.000000e+00> : vector<1xf32>
      %41 = vector.multi_reduction <add>, %40, %cst_18 [1, 2] : vector<1x7x512xf32> to vector<1xf32>
      %42 = vector.shape_cast %41 : vector<1xf32> to vector<1x1x1xf32>
      %43 = vector.extract %42[0, 0, 0] : f32 from vector<1x1x1xf32>
      %cst_19 = arith.constant 1.20563273E-5 : f32
      %44 = arith.mulf %43, %cst_19 : f32
      %c0_20 = arith.constant 0 : index
      %c0_21 = arith.constant 0 : index
      %45 = memref.load %arg2[%c0_20, %c0_21] : memref<1x1xf32, #tpu.memory_space<smem>>
      memref.store %44, %arg2[%c0_20, %c0_21] : memref<1x1xf32, #tpu.memory_space<smem>>
    } else {
    }
    return
  }
  func.func @transform_0(%arg0: i32) -> (i32, i32, i32) {
    %c0_i32 = arith.constant 0 : i32
    %c0_i32_0 = arith.constant 0 : i32
    %c0_i32_1 = arith.constant 0 : i32
    return %c0_i32, %c0_i32_0, %arg0 : i32, i32, i32
  }
  func.func @transform_1(%arg0: i32) -> (i32, i32) {
    %c0_i32 = arith.constant 0 : i32
    %c0_i32_0 = arith.constant 0 : i32
    %c0_i32_1 = arith.constant 0 : i32
    return %c0_i32, %c0_i32_0 : i32, i32
  }
}

</mosaic_0001>

<bundles_post_ra>
// kernel: tpu_custom_call.1
= control target key start
LH: loop header
LB: loop body
LE: loop exit
PB: predicated region body
PF: predicated region fallthrough
CT: control target
= control target key end

     0   :  { %6 = vsyncpa [#allocation4], 0  ;;  %s3240_s0 = inlined_call_operand.hbm [shape: f32[9,9,512], index: 0, kind: input, shape index: {}]   ;;  %s3241_s1 = inlined_call_operand.hbm [shape: f32[1,1], index: 1, kind: output, shape index: {}]  }
   0x1   :  { %7 = vsyncpa [#allocation5], 0  ;;  %s1199_s6 = smov [#allocation3]   ;;  %s1163_s10 = scalar_lea.hbm %s3240_s0, 9216 }
   0x2   :  { %s13_s7 = sshll.u32 %s1199_s6, 4  ;;  %p1164_p0 = scmp.ne.s32.totalorder %s3240_s0, %s1163_s10  ;;  %s14_s7 = int_to_ptr.vmem [resolvable:$true] %s13_s7 }
   0x3   :  { %p1167_p1 = scmp.lt.u32.totalorder %s1163_s10, %s3240_s0 }
   0x5   :  { %p1169_p2 = pnand %p1167_p1, %p1164_p0 }
   0x7   :  { %1172 = shalt.err (!%p1169_p2)
}
   0x8   :  { %s1173_s15 = scalar_lea.vmem %s14_s7, 9216  ;;  %p1178_p4 = scmp.lt.s32.totalorder %s14_s7, %s14_s7 }
   0x9   :  { %p1174_p3 = scmp.ne.s32.totalorder %s14_s7, %s1173_s15  ;;  %p1179_p5 = scmp.lt.s32.totalorder %s1173_s15, %s1173_s15 }
   0xb   :  { %p1180_p6 = por %p1179_p5, %p1178_p4 }
   0xd   :  { %p1181_p7 = pnand %p1180_p6, %p1174_p3 }
   0xf   :  { %1184 = shalt.err (!%p1181_p7)
}
  0x10   :  { %s1200_s16 = smov 512   ;;  %s1201_s17 = smov 32  }
  0x11   :  { %19 = dma.hbm_to_vmem [thread:$0]  %s3240_s0, 9216, %s14_s7, [#allocation4], %s1200_s16, %s1200_s16, %s1201_s17  }
  0x12   :  { %1195 = dma.done.wait [#allocation4], 9216  }
  0x13   :  { %1196 = vsyncadd [#allocation4], 4294958080  ;;  %v1202_v0 = vmov 0.0   ;;  %v1227_v1 = vld [vmem:[#allocation3] sm:$0xff]  ;;  %v1229_v2 = vld [vmem:[#allocation3 + $0x8] sm:$0xff]  ;;  %vm483_vm0 = vcmask 1046528  }
  0x14   :  { %27 = vst [vmem:[#allocation2] sm:$0x7f] %v1202_v0  ;;  %28 = vst [vmem:[#allocation2 + $0x8] sm:$0x7f] %v1202_v0  ;;  %v1231_v3 = vld [vmem:[#allocation3 + $0x10] sm:$0xff]  ;;  %v1233_v4 = vld [vmem:[#allocation3 + $0x18] sm:$0xff] }
  0x15   :  { %29 = vst [vmem:[#allocation2 + $0x10] sm:$0x7f] %v1202_v0  ;;  %30 = vst [vmem:[#allocation2 + $0x18] sm:$0x7f] %v1202_v0  ;;  %v1235_v5 = vld [vmem:[#allocation3 + $0x20] sm:$0x1] }
  0x16   :  { %3458 = vst [vmem:[#allocation9_spill] sm:$0xff] %v1227_v1  ;;  %3459 = vst [vmem:[#allocation10_spill] sm:$0xff] %v1229_v2  ;;  %v1237_v6 = vld [vmem:[#allocation3 + $0x40] sm:$0xff]  ;;  %v103_v7 = vmul.f32 4.0, %v1227_v1  ;;  %v1240_v8 = vld [vmem:[#allocation3 + $0x28] sm:$0x1] }
  0x17   :  { %3460 = vst [vmem:[#allocation11_spill] sm:$0xff] %v1231_v3  ;;  %3461 = vst [vmem:[#allocation12_spill] sm:$0xff] %v1233_v4  ;;  %v1242_v9 = vld [vmem:[#allocation3 + $0x48] sm:$0xff]  ;;  %v1244_v10 = vld [vmem:[#allocation3 + $0x50] sm:$0xff]  ;;  %v104_v11 = vmul.f32 4.0, %v1229_v2  ;;  %v105_v15 = vmul.f32 4.0, %v1231_v3 }
  0x18   :  { %3462 = vst [vmem:[#allocation13_spill] sm:$0xff] %v1235_v5  ;;  %3463 = vst [vmem:[#allocation14_spill] sm:$0xff] %v1237_v6  ;;  %v1247_v12 = vld [vmem:[#allocation3 + $0x30] sm:$0x1]  ;;  %v1249_v13 = vld [vmem:[#allocation3 + $0x38] sm:$0x1]  ;;  %v1268_v24 = vsub.f32 %v103_v7, %v1237_v6 }
  0x19   :  { %3464 = vst [vmem:[#allocation15_spill] sm:$0xff] %v1240_v8  ;;  %3465 = vst [vmem:[#allocation16_spill] sm:$0xff] %v1242_v9  ;;  %v1251_v14 = vld [vmem:[#allocation3 + $0x58] sm:$0xff]  ;;  %v1254_v16 = vld [vmem:[#allocation3 + $0x60] sm:$0x1]  ;;  %v106_v18 = vmul.f32 4.0, %v1233_v4  ;;  %v1282_v30 = vsub.f32 %v104_v11, %v1242_v9  ;;  %v1294_v36 = vsub.f32 %v105_v15, %v1244_v10 }
  0x1a   :  { %3466 = vst [vmem:[#allocation17_spill] sm:$0xff] %v1244_v10  ;;  %3467 = vst [vmem:[#allocation18_spill] sm:$0xff] %v1247_v12  ;;  %v1256_v17 = vld [vmem:[#allocation3 + $0x68] sm:$0x1]  ;;  %v111_v19 = vmul.f32 4.0, %v1237_v6  ;;  %v1263_v21 = vmul.f32 4.0, %v1235_v5 }
  0x1b   :  { %3468 = vst [vmem:[#allocation19_spill] sm:$0xff] %v1249_v13  ;;  %3469 = vst [vmem:[#allocation20_spill] sm:$0xff] %v1251_v14  ;;  %v1260_v20 = vld [vmem:[#allocation3 + $0x70] sm:$0x1]  ;;  %v112_v22 = vmul.f32 4.0, %v1242_v9  ;;  %v113_v23 = vmul.f32 4.0, %v1244_v10  ;;  %v1300_v40 = vsub.f32 %v106_v18, %v1251_v14 }
  0x1c   :  { %3470 = vst [vmem:[#allocation21_spill] sm:$0xff] %v1254_v16  ;;  %3471 = vst [vmem:[#allocation22_spill] sm:$0xff] %v1256_v17  ;;  %v1270_v25 = vld [vmem:[#allocation3 + $0x78] sm:$0x1]  ;;  %v1272_v26 = vld [vmem:[#allocation3 + $0x80] sm:$0xff]  ;;  %v1275_v27 = vmul.f32 4.0, %v1240_v8  ;;  %v175_v37 = vsub.f32 %v111_v19, %v1227_v1 }
  0x1d   :  { %3472 = vst [vmem:[#allocation23_spill] sm:$0xff] %v1260_v20  ;;  %3473 = vst [vmem:[#allocation24_spill] sm:$0xff] %v1263_v21  ;;  %v1278_v28 = vmul.f32 4.0, %v1247_v12  ;;  %v114_v29 = vmul.f32 4.0, %v1251_v14  ;;  %v1284_v31 = vld [vmem:[#allocation3 + $0x88] sm:$0xff]  ;;  %v1286_v32 = vld [vmem:[#allocation3 + $0x90] sm:$0xff]  ;;  %v176_v38 = vsub.f32 %v112_v22, %v1229_v2  ;;  %v177_v39 = vsub.f32 %v113_v23, %v1231_v3 }
  0x1e   :  { %3474 = vst [vmem:[#allocation25_spill] sm:$0xff] %v1268_v24  ;;  %3475 = vst [vmem:[#allocation26_spill] sm:$0xff] %v1270_v25  ;;  %v1289_v33 = vmul.f32 4.0, %v1249_v13  ;;  %v115_v34 = vmul.f32 4.0, %v1254_v16  ;;  %v116_v35 = vmul.f32 4.0, %v1256_v17  ;;  %v1302_v41 = vld [vmem:[#allocation3 + $0x98] sm:$0xff]  ;;  %v1342_v61 = vsub.f32 %v175_v37, %v1272_v26 }
  0x1f   :  { %3476 = vst [vmem:[#allocation27_spill] sm:$0xff] %v1272_v26  ;;  %3477 = vst [vmem:[#allocation28_spill] sm:$0xff] %v1275_v27  ;;  %v117_v42 = vmul.f32 4.0, %v1260_v20  ;;  %v118_v43 = vmul.f32 4.0, %v1270_v25  ;;  %v1307_v44 = vmul.f32 4.0, %v1272_v26  ;;  %v1314_v47 = vmul.f32 4.0, %v1284_v31 }
  0x20   :  { %3478 = vst [vmem:[#allocation29_spill] sm:$0xff] %v1278_v28  ;;  %3479 = vst [vmem:[#allocation30_spill] sm:$0xff] %v1282_v30  ;;  %v1311_v46 = vld [vmem:[#allocation3 + $0xa0] sm:$0x1]  ;;  %v1317_v48 = vmul.f32 4.0, %v1286_v32  ;;  %v178_v49 = vsub.f32 %v114_v29, %v1233_v4  ;;  %v179_v53 = vsub.f32 %v115_v34, %v1235_v5  ;;  %v180_v54 = vsub.f32 %v116_v35, %v1240_v8  ;;  %v1336_v59 = vld [vmem:[#allocation3 + $0xc8] sm:$0xff] }
  0x21   :  { %3480 = vst [vmem:[#allocation31_spill] sm:$0xff] %v1284_v31  ;;  %3481 = vst [vmem:[#allocation32_spill] sm:$0xff] %v1286_v32  ;;  %v1322_v51 = vld [vmem:[#allocation3 + $0xa8] sm:$0x1]  ;;  %v1324_v52 = vld [vmem:[#allocation3 + $0xb0] sm:$0x1]  ;;  %v1345_v62 = vsub.f32 %v176_v38, %v1284_v31  ;;  %v1348_v63 = vsub.f32 %v177_v39, %v1286_v32  ;;  %v181_v11 = vsub.f32 %v117_v42, %v1247_v12 }
  0x22   :  { %3482 = vst [vmem:[#allocation33_spill] sm:$0xff] %v1289_v33  ;;  %3483 = vst [vmem:[#allocation34_spill] sm:$0xff] %v1294_v36  ;;  %v1332_v57 = vld [vmem:[#allocation3 + $0xb8] sm:$0x1]  ;;  %v1334_v58 = vld [vmem:[#allocation3 + $0xc0] sm:$0xff]  ;;  %v1339_v60 = vmul.f32 4.0, %v1302_v41  ;;  %v182_v15 = vsub.f32 %v118_v43, %v1249_v13  ;;  %v183_v18 = vsub.f32 %v1307_v44, %v1237_v6  ;;  %v184_v34 = vsub.f32 %v1314_v47, %v1242_v9 }
  0x23   :  { %3484 = vst [vmem:[#allocation35_spill] sm:$0xff] %v1300_v40  ;;  %3485 = vst [vmem:[#allocation36_spill] sm:$0xff] %v1302_v41  ;;  %v1350_v0 = vld [vmem:[#allocation3 + $0xd0] sm:$0xff]  ;;  %v1353_v7 = vmul.f32 4.0, %v1311_v46  ;;  %v1359_v19 = vld [vmem:[#allocation3 + $0xd8] sm:$0xff]  ;;  %v1366_v29 = vmul.f32 4.0, %v1322_v51  ;;  %v185_v35 = vsub.f32 %v1317_v48, %v1244_v10  ;;  %v1373_v37 = vsub.f32 %v178_v49, %v1302_v41 }
  0x24   :  { %3486 = vst [vmem:[#allocation37_spill] sm:$0xff] %v1311_v46  ;;  %3487 = vst [vmem:[#allocation38_spill] sm:$0xff] %v1322_v51  ;;  %v1361_v22 = vld [vmem:[#allocation3 + $0xe0] sm:$0x1]  ;;  %v1363_v23 = vld [vmem:[#allocation3 + $0xe8] sm:$0x1]  ;;  %v186_v48 = vsub.f32 %v1339_v60, %v1251_v14  ;;  %v1395_v49 = vsub.f32 %v179_v53, %v1311_v46  ;;  %v1398_v56 = vsub.f32 %v180_v54, %v1322_v51 }
  0x25   :  { %3488 = vst [vmem:[#allocation39_spill] sm:$0xff] %v1324_v52  ;;  %3489 = vst [vmem:[#allocation40_spill] sm:$0xff] %v1332_v57  ;;  %v1375_v38 = vld [vmem:[#allocation3 + $0xf0] sm:$0x1]  ;;  %v1378_v39 = vmul.f32 4.0, %v1324_v52  ;;  %v1381_v42 = vmul.f32 4.0, %v1332_v57  ;;  %v187_v28 = vsub.f32 %v1353_v7, %v1254_v16  ;;  %v1413_v60 = vsub.f32 %v181_v11, %v1324_v52 }
  0x26   :  { %3490 = vst [vmem:[#allocation41_spill] sm:$0xff] %v1334_v58  ;;  %3491 = vst [vmem:[#allocation42_spill] sm:$0xff] %v1336_v59  ;;  %v1384_v43 = vmul.f32 4.0, %v1334_v58  ;;  %v1387_v44 = vmul.f32 4.0, %v1336_v59  ;;  %v1390_v47 = vmul.f32 4.0, %v1350_v0  ;;  %v1402_v50 = vld [vmem:[#allocation3 + $0x100] sm:$0xff]  ;;  %v188_v21 = vsub.f32 %v1366_v29, %v1256_v17 }
  0x27   :  { %3492 = vst [vmem:[#allocation43_spill] sm:$0xff] %v1342_v61  ;;  %3493 = vst [vmem:[#allocation44_spill] sm:$0xff] %v1345_v62  ;;  %v1400_v55 = vld [vmem:[#allocation3 + $0xf8] sm:$0x1]  ;;  %v1405_v45 = vmul.f32 4.0, %v1359_v19  ;;  %v1408_v33 = vmul.f32 4.0, %v1361_v22  ;;  %v1430_v7 = vsub.f32 %v182_v15, %v1332_v57  ;;  %v1462_v8 = vsub.f32 %v184_v34, %v1336_v59 }
  0x28   :  { %3494 = vst [vmem:[#allocation45_spill] sm:$0xff] %v1348_v63  ;;  %3495 = vst [vmem:[#allocation46_spill] sm:$0xff] %v1350_v0  ;;  %v1415_v53 = vld [vmem:[#allocation3 + $0x108] sm:$0xff]  ;;  %v1417_v54 = vld [vmem:[#allocation3 + $0x110] sm:$0xff]  ;;  %v1425_v27 = vmul.f32 4.0, %v1375_v38  ;;  %v1459_v63 = vsub.f32 %v183_v18, %v1334_v58  ;;  %v1465_v29 = vsub.f32 %v185_v35, %v1350_v0  ;;  %v1476_v36 = vmul.f32 4.0, %v1400_v55 }
  0x29   :  { %3496 = vst [vmem:[#allocation47_spill] sm:$0xff] %v1359_v19  ;;  %3497 = vst [vmem:[#allocation48_spill] sm:$0xff] %v1361_v22  ;;  %v1432_v11 = vld [vmem:[#allocation3 + $0x120] sm:$0x1]  ;;  %v1436_v16 = vld [vmem:[#allocation3 + $0x130] sm:$0x1]  ;;  %v1496_v24 = vsub.f32 %v186_v48, %v1359_v19  ;;  %v1499_v34 = vsub.f32 %v187_v28, %v1361_v22  ;;  %v1521_v28 = vsub.f32 %v188_v21, %v1363_v23 }
  0x2a   :  { %3498 = vst [vmem:[#allocation49_spill] sm:$0xff] %v1363_v23  ;;  %3499 = vst [vmem:[#allocation50_spill] sm:$0xff] %v1373_v37  ;;  %v1438_v13 = vld [vmem:[#allocation3 + $0x138] sm:$0x1]  ;;  %v1450_v17 = vld [vmem:[#allocation3 + $0x148] sm:$0xff]  ;;  %v1479_v18 = vmul.f32 4.0, %v1402_v50 }
  0x2b   :  { %3500 = vst [vmem:[#allocation51_spill] sm:$0xff] %v1375_v38  ;;  %3501 = vst [vmem:[#allocation52_spill] sm:$0xff] %v1378_v39  ;;  %v1452_v5 = vld [vmem:[#allocation3 + $0x150] sm:$0xff]  ;;  %v1454_v37 = vld [vmem:[#allocation3 + $0x158] sm:$0xff]  ;;  %v1515_v30 = vmul.f32 4.0, %v1417_v54  ;;  %v1532_v2 = vmul.f32 4.0, %v1432_v11 }
  0x2c   :  { %3502 = vst [vmem:[#allocation53_spill] sm:$0xff] %v1381_v42  ;;  %3503 = vst [vmem:[#allocation54_spill] sm:$0xff] %v1384_v43  ;;  %v1467_v15 = vld [vmem:[#allocation3 + $0x160] sm:$0x1]  ;;  %v1469_v62 = vld [vmem:[#allocation3 + $0x168] sm:$0x1] }
  0x2d   :  { %3504 = vst [vmem:[#allocation55_spill] sm:$0xff] %v1387_v44  ;;  %3505 = vst [vmem:[#allocation56_spill] sm:$0xff] %v1390_v47  ;;  %v1471_v61 = vld [vmem:[#allocation3 + $0x170] sm:$0x1]  ;;  %v1473_v40 = vld [vmem:[#allocation3 + $0x178] sm:$0x1] }
  0x2e   :  { %3506 = vst [vmem:[#allocation57_spill] sm:$0xff] %v1395_v49  ;;  %3507 = vst [vmem:[#allocation58_spill] sm:$0xff] %v1398_v56  ;;  %v1419_v56 = vld [vmem:[#allocation3 + $0x118] sm:$0xff]  ;;  %v1422_v49 = vmul.f32 4.0, %v1363_v23  ;;  %v1485_v12 = vld [vmem:[#allocation3 + $0x180] sm:$0xff]  ;;  %v1538_v52 = vmul.f32 4.0, %v1436_v16 }
  0x2f   :  { %3508 = vst [vmem:[#allocation59_spill] sm:$0xff] %v1400_v55  ;;  %3509 = vst [vmem:[#allocation60_spill] sm:$0xff] %v1402_v50  ;;  %v1501_v14 = vld [vmem:[#allocation3 + $0x198] sm:$0xff]  ;;  %v1503_v35 = vld [vmem:[#allocation3 + $0x1a0] sm:$0x1]  ;;  %v1518_v48 = vmul.f32 4.0, %v1419_v56 }
  0x30   :  { %3510 = vst [vmem:[#allocation61_spill] sm:$0xff] %v1405_v45  ;;  %3511 = vst [vmem:[#allocation62_spill] sm:$0xff] %v1408_v33  ;;  %v1505_v10 = vld [vmem:[#allocation3 + $0x1a8] sm:$0x1]  ;;  %v1507_v9 = vld [vmem:[#allocation3 + $0x1b0] sm:$0x1] }
  0x31   :  { %3512 = vst [vmem:[#allocation63_spill] sm:$0xff] %v1413_v60  ;;  %3513 = vst [vmem:[#allocation64_spill] sm:$0xff] %v1415_v53  ;;  %v1434_v60 = vld [vmem:[#allocation3 + $0x128] sm:$0x1]  ;;  %v1509_v6 = vld [vmem:[#allocation3 + $0x1b8] sm:$0x1] }
  0x32   :  { %3514 = vst [vmem:[#allocation65_spill] sm:$0xff] %v1417_v54  ;;  %3515 = vst [vmem:[#allocation66_spill] sm:$0xff] %v1419_v56  ;;  %v1527_v4 = vld [vmem:[#allocation3 + $0x1d0] sm:$0xff]  ;;  %v1529_v3 = vld [vmem:[#allocation3 + $0x1d8] sm:$0xff]  ;;  %v1535_v1 = vmul.f32 4.0, %v1434_v60  ;;  %v1541_v21 = vmul.f32 4.0, %v1438_v13 }
  0x33   :  { %3516 = vst [vmem:[#allocation67_spill] sm:$0xff] %v1422_v49  ;;  %3517 = vst [vmem:[#allocation68_spill] sm:$0xff] %v1425_v27  ;;  %v1545_v27 = vld [vmem:[#allocation3 + $0x1e8] sm:$0x1]  ;;  %v1547_v51 = vld [vmem:[#allocation3 + $0x1f0] sm:$0x1] }
  0x34   :  { %3518 = vst [vmem:[#allocation69_spill] sm:$0xff] %v1430_v7  ;;  %3519 = vst [vmem:[#allocation70_spill] sm:$0xff] %v1432_v11  ;;  %v1448_v7 = vld [vmem:[#allocation3 + $0x140] sm:$0xff]  ;;  %v1549_v49 = vld [vmem:[#allocation3 + $0x1f8] sm:$0x1]  ;;  %v1555_v33 = vmul.f32 4.0, %v1450_v17 }
  0x35   :  { %3520 = vst [vmem:[#allocation71_spill] sm:$0xff] %v1434_v60  ;;  %3521 = vst [vmem:[#allocation72_spill] sm:$0xff] %v1436_v16  ;;  %v1552_v46 = vmul.f32 4.0, %v1448_v7  ;;  %v1558_v41 = vmul.f32 4.0, %v1452_v5  ;;  %v1561_v45 = vmul.f32 4.0, %v1454_v37  ;;  %v1563_v32 = vld [vmem:[#allocation3 + $0x200] sm:$0xff] }
  0x36   :  { %3522 = vst [vmem:[#allocation73_spill] sm:$0xff] %v1438_v13  ;;  %3523 = vst [vmem:[#allocation74_spill] sm:$0xff] %v1448_v7  ;;  %v1565_v47 = vld [vmem:[#allocation3 + $0x208] sm:$0xff]  ;;  %v1567_v31 = vld [vmem:[#allocation3 + $0x210] sm:$0xff]  ;;  %v1572_v26 = vmul.f32 4.0, %v1467_v15  ;;  %v1575_v43 = vmul.f32 4.0, %v1469_v62 }
  0x37   :  { %3524 = vst [vmem:[#allocation75_spill] sm:$0xff] %v1450_v17  ;;  %3525 = vst [vmem:[#allocation76_spill] sm:$0xff] %v1452_v5  ;;  %v1569_v44 = vld [vmem:[#allocation3 + $0x218] sm:$0xff]  ;;  %v1578_v25 = vmul.f32 4.0, %v1471_v61  ;;  %v1581_v42 = vmul.f32 4.0, %v1473_v40  ;;  %v1605_v17 = vmul.f32 4.0, %v1505_v10 }
  0x38   :  { %3526 = vst [vmem:[#allocation77_spill] sm:$0xff] %v1454_v37  ;;  %3527 = vst [vmem:[#allocation78_spill] sm:$0xff] %v1459_v63  ;;  %v1512_v63 = vmul.f32 4.0, %v1415_v53  ;;  %v1583_v20 = vld [vmem:[#allocation3 + $0x220] sm:$0x1]  ;;  %v1588_v37 = vmul.f32 4.0, %v1485_v12 }
  0x39   :  { %3528 = vst [vmem:[#allocation79_spill] sm:$0xff] %v1462_v8  ;;  %3529 = vst [vmem:[#allocation80_spill] sm:$0xff] %v1465_v29  ;;  %v1487_v29 = vld [vmem:[#allocation3 + $0x188] sm:$0xff]  ;;  %v1489_v8 = vld [vmem:[#allocation3 + $0x190] sm:$0xff]  ;;  %vm812_vm1 = vcmask 1047553   ;;  %vm1010_vm2 = vcmask 1040384  }
  0x3a   :  { %3530 = vst [vmem:[#allocation81_spill] sm:$0xff] %v1467_v15  ;;  %3531 = vst [vmem:[#allocation82_spill] sm:$0xff] %v1469_v62  ;;  %v1585_v39 = vld [vmem:[#allocation3 + $0x228] sm:$0x1]  ;;  %v1591_v5 = vmul.f32 4.0, %v1487_v29  ;;  %v1594_v15 = vmul.f32 4.0, %v1489_v8 }
  0x3b   :  { %3532 = vst [vmem:[#allocation83_spill] sm:$0xff] %v1471_v61  ;;  %3533 = vst [vmem:[#allocation84_spill] sm:$0xff] %v1473_v40  ;;  %v1597_v62 = vmul.f32 4.0, %v1501_v14  ;;  %v1599_v61 = vld [vmem:[#allocation3 + $0x230] sm:$0x1]  ;;  %v1602_v40 = vmul.f32 4.0, %v1503_v35 }
  0x3c   :  { %3534 = vst [vmem:[#allocation85_spill] sm:$0xff] %v1485_v12  ;;  %3535 = vst [vmem:[#allocation86_spill] sm:$0xff] %v1487_v29  ;;  %v1608_v12 = vmul.f32 4.0, %v1507_v9  ;;  %v1611_v29 = vmul.f32 4.0, %v1509_v6  ;;  %s1185_s23 = scalar_lea.hbm %s3241_s1, 16 }
  0x3d   :  { %3536 = vst [vmem:[#allocation87_spill] sm:$0xff] %v1489_v8  ;;  %3537 = vst [vmem:[#allocation88_spill] sm:$0xff] %v1496_v24  ;;  %v1525_v24 = vld [vmem:[#allocation3 + $0x1c8] sm:$0xff]  ;;  %p1186_p8 = scmp.ne.s32.totalorder %s3241_s1, %s1185_s23  ;;  %p1189_p9 = scmp.lt.u32.totalorder %s1185_s23, %s3241_s1 }
  0x3e   :  { %3538 = vst [vmem:[#allocation89_spill] sm:$0xff] %v1499_v34  ;;  %3539 = vst [vmem:[#allocation90_spill] sm:$0xff] %v1501_v14  ;;  %v1523_v34 = vld [vmem:[#allocation3 + $0x1c0] sm:$0xff]  ;;  %v1619_v14 = vmul.f32 4.0, %v1525_v24 }
  0x3f   :  { %3540 = vst [vmem:[#allocation91_spill] sm:$0xff] %v1503_v35  ;;  %3541 = vst [vmem:[#allocation92_spill] sm:$0xff] %v1505_v10  ;;  %v1616_v8 = vmul.f32 4.0, %v1523_v34  ;;  %v1622_v35 = vmul.f32 4.0, %v1527_v4  ;;  %v1625_v10 = vmul.f32 4.0, %v1529_v3  ;;  %p1191_p10 = pnand %p1189_p9, %p1186_p8 }
  0x40   :  { %3542 = vst [vmem:[#allocation93_spill] sm:$0xff] %v1507_v9  ;;  %3543 = vst [vmem:[#allocation94_spill] sm:$0xff] %v1509_v6  ;;  %v1631_v6 = vmul.f32 4.0, %v1545_v27 }
  0x41   :  { %3544 = vst [vmem:[#allocation95_spill] sm:$0xff] %v1521_v28  ;;  %3545 = vst [vmem:[#allocation96_spill] sm:$0xff] %v1523_v34  ;;  %v1543_v28 = vld [vmem:[#allocation3 + $0x1e0] sm:$0x1]  ;;  %v1637_v34 = vmul.f32 4.0, %v1549_v49 }
  0x42   :  { %3546 = vst [vmem:[#allocation97_spill] sm:$0xff] %v1525_v24  ;;  %3547 = vst [vmem:[#allocation98_spill] sm:$0xff] %v1527_v4  ;;  %v1628_v9 = vmul.f32 4.0, %v1543_v28  ;;  %v167_v24 = vmul.f32 4.0, %v1563_v32  ;;  %v168_v4 = vmul.f32 4.0, %v1565_v47 }
  0x43   :  { %3548 = vst [vmem:[#allocation99_spill] sm:$0xff] %v1529_v3  ;;  %3549 = vst [vmem:[#allocation100_spill] sm:$0xff] %v1543_v28  ;;  %v170_v3 = vmul.f32 4.0, %v1569_v44  ;;  %v1644_v28 = vmul.f32 4.0, %v1583_v20 }
  0x44   :  { %3550 = vst [vmem:[#allocation101_spill] sm:$0xff] %v1545_v27  ;;  %3551 = vst [vmem:[#allocation102_spill] sm:$0xff] %v1547_v51  ;;  %v1647_v27 = vmul.f32 4.0, %v1585_v39 }
  0x45   :  { %3552 = vst [vmem:[#allocation103_spill] sm:$0xff] %v1549_v49  ;;  %3553 = vst [vmem:[#allocation104_spill] sm:$0xff] %v1563_v32  ;;  %v198_v32 = vsub.f32 %v1476_v36, %v1332_v57  ;;  %v205_v36 = vsub.f32 %v1538_v52, %v1375_v38  ;;  %v212_v52 = vsub.f32 %v1575_v43, %v1434_v60  ;;  %v3570_v57 = vld [vmem:[#allocation76_spill] sm:$0xff] }
  0x46   :  { %3554 = vst [vmem:[#allocation105_spill] sm:$0xff] %v1565_v47  ;;  %3555 = vst [vmem:[#allocation106_spill] sm:$0xff] %v1567_v31  ;;  %v3575_v47 = vld [vmem:[#allocation84_spill] sm:$0xff] }
  0x47   :  { %3556 = vst [vmem:[#allocation107_spill] sm:$0xff] %v1569_v44  ;;  %3557 = vst [vmem:[#allocation108_spill] sm:$0xff] %v1583_v20  ;;  %v200_v44 = vsub.f32 %v1512_v63, %v1336_v59  ;;  %v201_v20 = vsub.f32 %v1515_v30, %v1350_v0  ;;  %v207_v63 = vsub.f32 %v1552_v46, %v1402_v50  ;;  %v3572_v0 = vld [vmem:[#allocation81_spill] sm:$0xff]  ;;  %v3573_v59 = vld [vmem:[#allocation82_spill] sm:$0xff] }
  0x48   :  { %3558 = vst [vmem:[#allocation109_spill] sm:$0xff] %v1585_v39  ;;  %3559 = vst [vmem:[#allocation110_spill] sm:$0xff] %v1591_v5  ;;  %v1613_v5 = vld [vmem:[#allocation3 + $0x238] sm:$0x1]  ;;  %v202_v39 = vsub.f32 %v1518_v48, %v1359_v19  ;;  %v208_v30 = vsub.f32 %v1555_v33, %v1415_v53  ;;  %v209_v48 = vsub.f32 %v1558_v41, %v1417_v54  ;;  %v3571_v19 = vld [vmem:[#allocation77_spill] sm:$0xff] }
  0x49   :  { %3560 = vst [vmem:[#allocation111_spill] sm:$0xff] %v1599_v61  ;;  %3561 = vst [vmem:[#allocation112_spill] sm:$0xff] %v1611_v29  ;;  %v1634_v29 = vmul.f32 4.0, %v1547_v51  ;;  %v1650_v51 = vmul.f32 4.0, %v1599_v61  ;;  %v1653_v49 = vmul.f32 4.0, %v1613_v5  ;;  %v203_v61 = vsub.f32 %v1532_v2, %v1361_v22 }
  0x4a   :  { %3562 = vst [vmem:[#allocation113_spill] sm:$0xff] %v1613_v5  ;;  %3563 = vst [vmem:[#allocation114_spill] sm:$0xff] %v1622_v35  ;;  %v169_v35 = vmul.f32 4.0, %v1567_v31  ;;  %v199_v31 = vsub.f32 %v1479_v18, %v1334_v58  ;;  %v204_v5 = vsub.f32 %v1535_v1, %v1363_v23  ;;  %v206_v18 = vsub.f32 %v1541_v21, %v1400_v55  ;;  %v3568_v23 = vld [vmem:[#allocation75_spill] sm:$0xff] }
  0x4b   :  { %3564 = vst [vmem:[#allocation115_spill] sm:$0xff] %v1644_v28  ;;  %3565 = vst [vmem:[#allocation116_spill] sm:$0xff] %v1647_v27  ;;  %v210_v2 = vsub.f32 %v1561_v45, %v1419_v56  ;;  %v211_v1 = vsub.f32 %v1572_v26, %v1432_v11  ;;  %v213_v21 = vsub.f32 %v1578_v25, %v1436_v16  ;;  %v3574_v58 = vld [vmem:[#allocation83_spill] sm:$0xff]  ;;  %v3581_v16 = vld [vmem:[#allocation90_spill] sm:$0xff] }
  0x4c   :  { %3566 = vst [vmem:[#allocation117_spill] sm:$0xff] %v1650_v51  ;;  %3567 = vst [vmem:[#allocation118_spill] sm:$0xff] %v1653_v49  ;;  %v214_v46 = vsub.f32 %v1581_v42, %v1438_v13  ;;  %v215_v33 = vsub.f32 %v1588_v37, %v1448_v7  ;;  %v217_v45 = vsub.f32 %v1594_v15, %v3570_v57  ;;  %v3577_v13 = vld [vmem:[#allocation85_spill] sm:$0xff]  ;;  %v3579_v57 = vld [vmem:[#allocation87_spill] sm:$0xff] }
  0x4d   :  { %v218_v26 = vsub.f32 %v1597_v62, %v3571_v19  ;;  %v219_v43 = vsub.f32 %v1602_v40, %v3572_v0  ;;  %v220_v25 = vsub.f32 %v1605_v17, %v3573_v59  ;;  %v221_v42 = vsub.f32 %v1608_v12, %v3574_v58  ;;  %v3582_v0 = vld [vmem:[#allocation91_spill] sm:$0xff]  ;;  %v3583_v59 = vld [vmem:[#allocation92_spill] sm:$0xff]  ;;  %v3584_v58 = vld [vmem:[#allocation93_spill] sm:$0xff] }
  0x4e   :  { %v226_v40 = vsub.f32 %v1625_v10, %v3581_v16  ;;  %v227_v17 = vsub.f32 %v1628_v9, %v3582_v0  ;;  %v228_v12 = vsub.f32 %v1631_v6, %v3583_v59  ;;  %v3592_v16 = vld [vmem:[#allocation99_spill] sm:$0xff]  ;;  %v3594_v0 = vld [vmem:[#allocation100_spill] sm:$0xff]  ;;  %v3595_v59 = vld [vmem:[#allocation101_spill] sm:$0xff] }
  0x4f   :  { %v3569_v41 = vld [vmem:[#allocation110_spill] sm:$0xff]  ;;  %v1731_v9 = vsub.f32 %v170_v3, %v3592_v16  ;;  %v3602_v3 = vld [vmem:[#allocation53_spill] sm:$0xff]  ;;  %v3607_v27 = vld [vmem:[#allocation27_spill] sm:$0xff] }
  0x50   :  { %v216_v22 = vsub.f32 %v3569_v41, %v3568_v23  ;;  %v3576_v37 = vld [vmem:[#allocation112_spill] sm:$0xff]  ;;  %v223_v41 = vsub.f32 %v1616_v8, %v3577_v13  ;;  %v3578_v23 = vld [vmem:[#allocation86_spill] sm:$0xff]  ;;  %v3611_v49 = vld [vmem:[#allocation31_spill] sm:$0xff] }
  0x51   :  { %v222_v7 = vsub.f32 %v3576_v37, %v3575_v47  ;;  %v224_v15 = vsub.f32 %v1619_v14, %v3578_v23  ;;  %v3580_v62 = vld [vmem:[#allocation114_spill] sm:$0xff]  ;;  %v229_v37 = vsub.f32 %v1634_v29, %v3584_v58  ;;  %v3586_v13 = vld [vmem:[#allocation96_spill] sm:$0xff]  ;;  %v3588_v23 = vld [vmem:[#allocation97_spill] sm:$0xff] }
  0x52   :  { %v225_v19 = vsub.f32 %v3580_v62, %v3579_v57  ;;  %v3585_v47 = vld [vmem:[#allocation94_spill] sm:$0xff]  ;;  %v1722_v14 = vsub.f32 %v167_v24, %v3586_v13  ;;  %v1725_v62 = vsub.f32 %v168_v4, %v3588_v23  ;;  %3593 = vst [vmem:[#allocation96_spill] sm:$0xff] %v1731_v9  ;;  %v3598_v4 = vld [vmem:[#allocation52_spill] sm:$0xff] }
  0x53   :  { %v230_v8 = vsub.f32 %v1637_v34, %v3585_v47  ;;  %v3590_v57 = vld [vmem:[#allocation98_spill] sm:$0xff] }
  0x54   :  { %3587 = vst [vmem:[#allocation110_spill] sm:$0xff] %v1722_v14  ;;  %3589 = vst [vmem:[#allocation112_spill] sm:$0xff] %v1725_v62  ;;  %v1728_v10 = vsub.f32 %v169_v35, %v3590_v57  ;;  %v3596_v58 = vld [vmem:[#allocation102_spill] sm:$0xff]  ;;  %v3599_v62 = vld [vmem:[#allocation23_spill] sm:$0xff] }
  0x55   :  { %v3600_v35 = vsub.f32 %v3598_v4, %v3599_v62  ;;  %v3603_v9 = vld [vmem:[#allocation26_spill] sm:$0xff]  ;;  %v3610_v14 = vld [vmem:[#allocation55_spill] sm:$0xff]  ;;  %v3614_v4 = vld [vmem:[#allocation56_spill] sm:$0xff] }
  0x56   :  { %3591 = vst [vmem:[#allocation114_spill] sm:$0xff] %v1728_v10  ;;  %v3604_v16 = vsub.f32 %v3602_v3, %v3603_v9  ;;  %v3606_v29 = vld [vmem:[#allocation54_spill] sm:$0xff]  ;;  %v3612_v51 = vsub.f32 %v3610_v14, %v3611_v49  ;;  %v3619_v3 = vld [vmem:[#allocation36_spill] sm:$0xff] }
  0x57   :  { %v1745_v10 = vsub.f32 %v3600_v35, %v1375_v38  ;;  %v3608_v28 = vsub.f32 %v3606_v29, %v3607_v27  ;;  %v3615_v35 = vld [vmem:[#allocation32_spill] sm:$0xff]  ;;  %v3623_v29 = vld [vmem:[#allocation37_spill] sm:$0xff]  ;;  %v3627_v14 = vld [vmem:[#allocation38_spill] sm:$0xff] }
  0x58   :  { %v1751_v6 = vsub.f32 %v3604_v16, %v1400_v55  ;;  %v1763_v24 = vsub.f32 %v3612_v51, %v1415_v53  ;;  %v3618_v16 = vld [vmem:[#allocation61_spill] sm:$0xff]  ;;  %v3626_v51 = vld [vmem:[#allocation67_spill] sm:$0xff] }
  0x59   :  { %3601 = vst [vmem:[#allocation97_spill] sm:$0xff] %v1745_v10  ;;  %v1757_v34 = vsub.f32 %v3608_v28, %v1402_v50  ;;  %v3616_v10 = vsub.f32 %v3614_v4, %v3615_v35  ;;  %v3622_v28 = vld [vmem:[#allocation62_spill] sm:$0xff]  ;;  %v3631_v4 = vld [vmem:[#allocation68_spill] sm:$0xff] }
  0x5a   :  { %3605 = vst [vmem:[#allocation52_spill] sm:$0xff] %v1751_v6  ;;  %3613 = vst [vmem:[#allocation54_spill] sm:$0xff] %v1763_v24  ;;  %v3620_v6 = vsub.f32 %v3618_v16, %v3619_v3  ;;  %v3624_v9 = vsub.f32 %v3622_v28, %v3623_v29  ;;  %v3628_v24 = vsub.f32 %v3626_v51, %v3627_v14  ;;  %v3710_v14 = vld [vmem:[#allocation25_spill] sm:$0xff] }
  0x5b   :  { %3609 = vst [vmem:[#allocation53_spill] sm:$0xff] %v1757_v34  ;;  %v1769_v38 = vsub.f32 %v3616_v10, %v1417_v54  ;;  %v3630_v10 = vld [vmem:[#allocation72_spill] sm:$0xff] }
  0x5c   :  { %v1775_v55 = vsub.f32 %v3620_v6, %v1419_v56  ;;  %v1781_v62 = vsub.f32 %v3624_v9, %v1432_v11  ;;  %v1787_v34 = vsub.f32 %v3628_v24, %v1434_v60  ;;  %v3635_v6 = vld [vmem:[#allocation73_spill] sm:$0xff]  ;;  %v3639_v9 = vld [vmem:[#allocation75_spill] sm:$0xff] }
  0x5d   :  { %3617 = vst [vmem:[#allocation55_spill] sm:$0xff] %v1769_v38  ;;  %v3632_v38 = vld [vmem:[#allocation39_spill] sm:$0xff]  ;;  %v1796_v16 = vsub.f32 %v198_v32, %v3635_v6  ;;  %v1802_v28 = vsub.f32 %v200_v44, %v3639_v9  ;;  %v3643_v24 = vld [vmem:[#allocation77_spill] sm:$0xff] }
  0x5e   :  { %3621 = vst [vmem:[#allocation56_spill] sm:$0xff] %v1775_v55  ;;  %3625 = vst [vmem:[#allocation61_spill] sm:$0xff] %v1781_v62  ;;  %v3633_v54 = vsub.f32 %v3631_v4, %v3632_v38  ;;  %v3637_v55 = vld [vmem:[#allocation74_spill] sm:$0xff]  ;;  %v3641_v62 = vld [vmem:[#allocation76_spill] sm:$0xff]  ;;  %v1808_v51 = vsub.f32 %v202_v39, %v3643_v24 }
  0x5f   :  { %3629 = vst [vmem:[#allocation62_spill] sm:$0xff] %v1787_v34  ;;  %3636 = vst [vmem:[#allocation68_spill] sm:$0xff] %v1796_v16  ;;  %v1799_v56 = vsub.f32 %v199_v31, %v3637_v55  ;;  %v1805_v11 = vsub.f32 %v201_v20, %v3641_v62  ;;  %v3645_v34 = vld [vmem:[#allocation81_spill] sm:$0xff]  ;;  %v3649_v32 = vld [vmem:[#allocation83_spill] sm:$0xff] }
  0x60   :  { %v1793_v53 = vsub.f32 %v3633_v54, %v3630_v10  ;;  %3640 = vst [vmem:[#allocation120_spill] sm:$0xff] %v1802_v28  ;;  %3644 = vst [vmem:[#allocation122_spill] sm:$0xff] %v1808_v51  ;;  %v1811_v60 = vsub.f32 %v203_v61, %v3645_v34  ;;  %v3647_v54 = vld [vmem:[#allocation82_spill] sm:$0xff]  ;;  %v1817_v16 = vsub.f32 %v205_v36, %v3649_v32  ;;  %v3651_v31 = vld [vmem:[#allocation84_spill] sm:$0xff] }
  0x61   :  { %3638 = vst [vmem:[#allocation119_spill] sm:$0xff] %v1799_v56  ;;  %3642 = vst [vmem:[#allocation121_spill] sm:$0xff] %v1805_v11  ;;  %v1814_v4 = vsub.f32 %v204_v5, %v3647_v54  ;;  %v3653_v44 = vld [vmem:[#allocation85_spill] sm:$0xff]  ;;  %v3655_v20 = vld [vmem:[#allocation86_spill] sm:$0xff] }
  0x62   :  { %3634 = vst [vmem:[#allocation67_spill] sm:$0xff] %v1793_v53  ;;  %3646 = vst [vmem:[#allocation123_spill] sm:$0xff] %v1811_v60  ;;  %v1820_v53 = vsub.f32 %v206_v18, %v3651_v31  ;;  %v1823_v6 = vsub.f32 %v207_v63, %v3653_v44  ;;  %v1826_v10 = vsub.f32 %v208_v30, %v3655_v20  ;;  %v3657_v39 = vld [vmem:[#allocation87_spill] sm:$0xff]  ;;  %v3659_v61 = vld [vmem:[#allocation90_spill] sm:$0xff] }
  0x63   :  { %3648 = vst [vmem:[#allocation124_spill] sm:$0xff] %v1814_v4  ;;  %3650 = vst [vmem:[#allocation125_spill] sm:$0xff] %v1817_v16  ;;  %v1829_v38 = vsub.f32 %v209_v48, %v3657_v39  ;;  %v1832_v60 = vsub.f32 %v210_v2, %v3659_v61  ;;  %v3661_v5 = vld [vmem:[#allocation91_spill] sm:$0xff]  ;;  %v3663_v36 = vld [vmem:[#allocation92_spill] sm:$0xff]  ;;  %v1844_v63 = vsub.f32 %v214_v46, %v3585_v47 }
  0x64   :  { %3652 = vst [vmem:[#allocation126_spill] sm:$0xff] %v1820_v53  ;;  %3654 = vst [vmem:[#allocation85_spill] sm:$0xff] %v1823_v6  ;;  %v1835_v4 = vsub.f32 %v211_v1, %v3661_v5  ;;  %v1838_v16 = vsub.f32 %v212_v52, %v3663_v36  ;;  %v3665_v18 = vld [vmem:[#allocation93_spill] sm:$0xff]  ;;  %v1847_v30 = vsub.f32 %v215_v33, %v3586_v13  ;;  %v3671_v1 = vld [vmem:[#allocation99_spill] sm:$0xff] }
  0x65   :  { %3656 = vst [vmem:[#allocation86_spill] sm:$0xff] %v1826_v10  ;;  %3658 = vst [vmem:[#allocation87_spill] sm:$0xff] %v1829_v38  ;;  %v1841_v53 = vsub.f32 %v213_v21, %v3665_v18  ;;  %v1850_v48 = vsub.f32 %v216_v22, %v3588_v23  ;;  %v1853_v2 = vsub.f32 %v217_v45, %v3590_v57  ;;  %v3676_v33 = vld [vmem:[#allocation103_spill] sm:$0xff]  ;;  %v3678_v22 = vld [vmem:[#allocation104_spill] sm:$0xff] }
  0x66   :  { %3660 = vst [vmem:[#allocation90_spill] sm:$0xff] %v1832_v60  ;;  %3662 = vst [vmem:[#allocation127_spill] sm:$0xff] %v1835_v4  ;;  %v1856_v4 = vsub.f32 %v218_v26, %v3671_v1  ;;  %v1859_v52 = vsub.f32 %v219_v43, %v3594_v0  ;;  %v1862_v21 = vsub.f32 %v220_v25, %v3595_v59  ;;  %v3680_v45 = vld [vmem:[#allocation105_spill] sm:$0xff]  ;;  %v3682_v26 = vld [vmem:[#allocation106_spill] sm:$0xff] }
  0x67   :  { %3664 = vst [vmem:[#allocation128_spill] sm:$0xff] %v1838_v16  ;;  %3666 = vst [vmem:[#allocation129_spill] sm:$0xff] %v1841_v53  ;;  %v1865_v46 = vsub.f32 %v221_v42, %v3596_v58  ;;  %v1871_v53 = vsub.f32 %v223_v41, %v3678_v22  ;;  %v1874_v16 = vsub.f32 %v224_v15, %v3680_v45  ;;  %v3684_v43 = vld [vmem:[#allocation107_spill] sm:$0xff]  ;;  %v3686_v25 = vld [vmem:[#allocation108_spill] sm:$0xff] }
  0x68   :  { %3667 = vst [vmem:[#allocation130_spill] sm:$0xff] %v1844_v63  ;;  %3668 = vst [vmem:[#allocation131_spill] sm:$0xff] %v1847_v30  ;;  %v1868_v63 = vsub.f32 %v222_v7, %v3676_v33  ;;  %v1877_v47 = vsub.f32 %v225_v19, %v3682_v26  ;;  %v3688_v42 = vld [vmem:[#allocation109_spill] sm:$0xff]  ;;  %v3690_v7 = vld [vmem:[#allocation111_spill] sm:$0xff] }
  0x69   :  { %3669 = vst [vmem:[#allocation132_spill] sm:$0xff] %v1850_v48  ;;  %3670 = vst [vmem:[#allocation133_spill] sm:$0xff] %v1853_v2  ;;  %v3692_v41 = vld [vmem:[#allocation113_spill] sm:$0xff]  ;;  %v3695_v59 = vld [vmem:[#allocation10_spill] sm:$0xff] }
  0x6a   :  { %3672 = vst [vmem:[#allocation99_spill] sm:$0xff] %v1856_v4  ;;  %3673 = vst [vmem:[#allocation134_spill] sm:$0xff] %v1859_v52  ;;  %v1880_v52 = vsub.f32 %v226_v40, %v3684_v43  ;;  %v1892_v33 = vsub.f32 %v230_v8, %v3692_v41  ;;  %v3694_v15 = vld [vmem:[#allocation9_spill] sm:$0xff]  ;;  %v3696_v0 = vld [vmem:[#allocation11_spill] sm:$0xff] }
  0x6b   :  { %3674 = vst [vmem:[#allocation135_spill] sm:$0xff] %v1862_v21  ;;  %3675 = vst [vmem:[#allocation136_spill] sm:$0xff] %v1865_v46  ;;  %v1883_v21 = vsub.f32 %v227_v17, %v3686_v25  ;;  %v1886_v46 = vsub.f32 %v228_v12, %v3688_v42  ;;  %v3697_v40 = vld [vmem:[#allocation12_spill] sm:$0xff]  ;;  %v3698_v5 = vld [vmem:[#allocation14_spill] sm:$0xff]  ;;  %v3715_v19 = vrot.slane %v3696_v0, 7 }
  0x6c   :  { %3677 = vst [vmem:[#allocation137_spill] sm:$0xff] %v1868_v63  ;;  %3679 = vst [vmem:[#allocation104_spill] sm:$0xff] %v1871_v53  ;;  %v1889_v63 = vsub.f32 %v229_v37, %v3690_v7  ;;  %v3700_v12 = vld [vmem:[#allocation17_spill] sm:$0xff]  ;;  %v3701_v42 = vld [vmem:[#allocation20_spill] sm:$0xff]  ;;  %v3718_v36 = vrot.slane %v3697_v40, 7  ;;  %v3721_v25 = vrot.slane %v3698_v5, 7 }
  0x6d   :  { %3681 = vst [vmem:[#allocation105_spill] sm:$0xff] %v1874_v16  ;;  %3683 = vst [vmem:[#allocation138_spill] sm:$0xff] %v1877_v47  ;;  %v3703_v41 = vld [vmem:[#allocation42_spill] sm:$0xff]  ;;  %v3705_v31 = vld [vmem:[#allocation47_spill] sm:$0xff] }
  0x6e   :  { %3685 = vst [vmem:[#allocation139_spill] sm:$0xff] %v1880_v52  ;;  %3687 = vst [vmem:[#allocation140_spill] sm:$0xff] %v1883_v21  ;;  %v3699_v21 = vld [vmem:[#allocation16_spill] sm:$0xff]  ;;  %v3704_v7 = vld [vmem:[#allocation46_spill] sm:$0xff] }
  0x6f   :  { %3689 = vst [vmem:[#allocation141_spill] sm:$0xff] %v1886_v46  ;;  %3691 = vst [vmem:[#allocation142_spill] sm:$0xff] %v1889_v63  ;;  %v3706_v32 = vld [vmem:[#allocation64_spill] sm:$0xff]  ;;  %v3707_v54 = vld [vmem:[#allocation65_spill] sm:$0xff]  ;;  %v3709_v46 = vrot.slane %v3694_v15, 7  ;;  %v3712_v63 = vrot.slane %v3695_v59, 7 }
  0x70   :  { %3693 = vst [vmem:[#allocation143_spill] sm:$0xff] %v1892_v33  ;;  %v3702_v33 = vld [vmem:[#allocation41_spill] sm:$0xff]  ;;  %v3708_v34 = vld [vmem:[#allocation66_spill] sm:$0xff]  ;;  %v3719_v17 = vld [vmem:[#allocation35_spill] sm:$0xff] }
  0x71   :  { %v1933_v37 = vsub.f32 %v3710_v14, %v3709_v46  ;;  %v3713_v8 = vld [vmem:[#allocation30_spill] sm:$0xff]  ;;  %v1948_v26 = vsub.f32 %v3719_v17, %v3718_v36  ;;  %v3722_v43 = vld [vmem:[#allocation43_spill] sm:$0xff]  ;;  %v3724_v14 = vrot.slane %v3699_v21, 7  ;;  %v3733_v17 = vrot.slane %v3607_v27, 7 }
  0x72   :  { %v1938_v29 = vsub.f32 %v3713_v8, %v3712_v63  ;;  %v3716_v58 = vld [vmem:[#allocation34_spill] sm:$0xff]  ;;  %v1953_v46 = vsub.f32 %v3722_v43, %v3721_v25  ;;  %v3727_v8 = vrot.slane %v3700_v12, 7  ;;  %v3736_v43 = vrot.slane %v3611_v49, 7 }
  0x73   :  { %3711 = vst [vmem:[#allocation144_spill] sm:$0xff] %v1933_v37  ;;  %v1943_v18 = vsub.f32 %v3716_v58, %v3715_v19  ;;  %3720 = vst [vmem:[#allocation147_spill] sm:$0xff] %v1948_v26  ;;  %v3725_v37 = vld [vmem:[#allocation44_spill] sm:$0xff]  ;;  %v3730_v58 = vrot.slane %v3701_v42, 7  ;;  %v3734_v26 = vld [vmem:[#allocation78_spill] sm:$0xff] }
  0x74   :  { %3714 = vst [vmem:[#allocation145_spill] sm:$0xff] %v1938_v29  ;;  %3723 = vst [vmem:[#allocation148_spill] sm:$0xff] %v1953_v46  ;;  %v1958_v63 = vsub.f32 %v3725_v37, %v3724_v14  ;;  %v3728_v29 = vld [vmem:[#allocation45_spill] sm:$0xff]  ;;  %v1973_v25 = vsub.f32 %v3734_v26, %v3733_v17  ;;  %v3737_v46 = vld [vmem:[#allocation79_spill] sm:$0xff]  ;;  %v3739_v37 = vrot.slane %v3615_v35, 7  ;;  %v3746_v26 = vrot.slane %v3703_v41, 7 }
  0x75   :  { %3717 = vst [vmem:[#allocation146_spill] sm:$0xff] %v1943_v18  ;;  %v1963_v19 = vsub.f32 %v3728_v29, %v3727_v8  ;;  %v3731_v18 = vld [vmem:[#allocation50_spill] sm:$0xff]  ;;  %v1978_v14 = vsub.f32 %v3737_v46, %v3736_v43  ;;  %v3742_v29 = vrot.slane %v3619_v3, 7  ;;  %v3748_v46 = vrot.slane %v3704_v7, 7 }
  0x76   :  { %3726 = vst [vmem:[#allocation149_spill] sm:$0xff] %v1958_v63  ;;  %v1968_v36 = vsub.f32 %v3731_v18, %v3730_v58  ;;  %3735 = vst [vmem:[#allocation152_spill] sm:$0xff] %v1973_v25  ;;  %v3740_v63 = vld [vmem:[#allocation80_spill] sm:$0xff]  ;;  %v3744_v18 = vrot.slane %v3702_v33, 7  ;;  %v3747_v25 = vld [vmem:[#allocation54_spill] sm:$0xff] }
  0x77   :  { %3729 = vst [vmem:[#allocation150_spill] sm:$0xff] %v1963_v19  ;;  %3738 = vst [vmem:[#allocation153_spill] sm:$0xff] %v1978_v14  ;;  %v1983_v8 = vsub.f32 %v3740_v63, %v3739_v37  ;;  %v3743_v19 = vld [vmem:[#allocation88_spill] sm:$0xff]  ;;  %v1998_v43 = vsub.f32 %v3747_v25, %v3746_v26  ;;  %v3749_v14 = vld [vmem:[#allocation55_spill] sm:$0xff]  ;;  %v3750_v63 = vrot.slane %v3705_v31, 7  ;;  %v3756_v25 = vrot.slane %v3707_v54, 7 }
  0x78   :  { %3732 = vst [vmem:[#allocation151_spill] sm:$0xff] %v1968_v36  ;;  %v1988_v58 = vsub.f32 %v3743_v19, %v3742_v29  ;;  %v3745_v36 = vld [vmem:[#allocation53_spill] sm:$0xff]  ;;  %v2003_v37 = vsub.f32 %v3749_v14, %v3748_v46  ;;  %v3752_v19 = vrot.slane %v1402_v50, 7  ;;  %v3758_v14 = vrot.slane %v3708_v34, 7 }
  0x79   :  { %3741 = vst [vmem:[#allocation154_spill] sm:$0xff] %v1983_v8  ;;  %v1993_v17 = vsub.f32 %v3745_v36, %v3744_v18  ;;  %v3751_v8 = vld [vmem:[#allocation56_spill] sm:$0xff]  ;;  %v3754_v36 = vrot.slane %v3706_v32, 7  ;;  %v2023_v46 = vsub.f32 %v1805_v11, %v3756_v25  ;;  %v3766_v11 = vrot.slane %v3643_v24, 7 }
  0x7a   :  { %v2008_v29 = vsub.f32 %v3751_v8, %v3750_v63  ;;  %v2013_v18 = vsub.f32 %v1799_v56, %v3752_v19  ;;  %v2028_v63 = vsub.f32 %v1808_v51, %v3758_v14  ;;  %v3760_v8 = vrot.slane %v3637_v55, 7 }
  0x7b   :  { %v2018_v26 = vsub.f32 %v1802_v28, %v3754_v36  ;;  %3757 = vst [vmem:[#allocation157_spill] sm:$0xff] %v2023_v46  ;;  %v3762_v56 = vrot.slane %v3639_v9, 7  ;;  %v3764_v28 = vrot.slane %v3641_v62, 7  ;;  %v2048_v14 = vsub.f32 %v1832_v60, %v3766_v11  ;;  %v3805_v46 = vld [vmem:[#allocation107_spill] sm:$0xff] }
  0x7c   :  { %3753 = vst [vmem:[#allocation155_spill] sm:$0xff] %v2013_v18  ;;  %3759 = vst [vmem:[#allocation158_spill] sm:$0xff] %v2028_v63  ;;  %v2033_v19 = vsub.f32 %v1823_v6, %v3760_v8  ;;  %v3768_v51 = vrot.slane %v3653_v44, 7  ;;  %v3770_v6 = vrot.slane %v3655_v20, 7  ;;  %v3776_v60 = vrot.slane %v3586_v13, 7  ;;  %v3804_v63 = vld [vmem:[#allocation39_spill] sm:$0xff] }
  0x7d   :  { %3755 = vst [vmem:[#allocation156_spill] sm:$0xff] %v2018_v26  ;;  %v2038_v36 = vsub.f32 %v1826_v10, %v3762_v56  ;;  %v2043_v25 = vsub.f32 %v1829_v38, %v3764_v28  ;;  %3767 = vst [vmem:[#allocation162_spill] sm:$0xff] %v2048_v14  ;;  %v3772_v10 = vrot.slane %v3657_v39, 7  ;;  %v3774_v38 = vrot.slane %v3659_v61, 7  ;;  %v3800_v14 = vld [vmem:[#allocation23_spill] sm:$0xff]  ;;  %v3807_v26 = vld [vmem:[#allocation96_spill] sm:$0xff] }
  0x7e   :  { %3761 = vst [vmem:[#allocation159_spill] sm:$0xff] %v2033_v19  ;;  %v2053_v8 = vsub.f32 %v1847_v30, %v3768_v51  ;;  %v2058_v56 = vsub.f32 %v1850_v48, %v3770_v6  ;;  %v2073_v51 = vsub.f32 %v1871_v53, %v3776_v60  ;;  %v3778_v30 = vrot.slane %v3588_v23, 7  ;;  %v3803_v19 = vld [vmem:[#allocation38_spill] sm:$0xff]  ;;  %v3858_v18 = vld [vmem:[#allocation113_spill] sm:$0xff] }
  0x7f   :  { %3763 = vst [vmem:[#allocation160_spill] sm:$0xff] %v2038_v36  ;;  %3765 = vst [vmem:[#allocation161_spill] sm:$0xff] %v2043_v25  ;;  %v2063_v28 = vsub.f32 %v1853_v2, %v3772_v10  ;;  %v2068_v11 = vsub.f32 %v1856_v4, %v3774_v38  ;;  %v3780_v48 = vrot.slane %v3590_v57, 7  ;;  %v3782_v2 = vrot.slane %v3671_v1, 7  ;;  %v3801_v25 = vld [vmem:[#allocation26_spill] sm:$0xff]  ;;  %v3802_v36 = vld [vmem:[#allocation37_spill] sm:$0xff] }
  0x80   :  { %3769 = vst [vmem:[#allocation163_spill] sm:$0xff] %v2053_v8  ;;  %3771 = vst [vmem:[#allocation164_spill] sm:$0xff] %v2058_v56  ;;  %v2078_v6 = vsub.f32 %v1874_v16, %v3778_v30  ;;  %v3784_v4 = vrot.slane %v3678_v22, 7  ;;  %v3787_v53 = vrot.slane %v3680_v45, 7  ;;  %v3790_v16 = vld [vmem:[#allocation106_spill] sm:$0xff] }
  0x81   :  { %3773 = vst [vmem:[#allocation165_spill] sm:$0xff] %v2063_v28  ;;  %3775 = vst [vmem:[#allocation166_spill] sm:$0xff] %v2068_v11  ;;  %v2083_v10 = vsub.f32 %v1877_v47, %v3780_v48  ;;  %v2088_v38 = vsub.f32 %v1880_v52, %v3782_v2  ;;  %v3785_v11 = vld [vmem:[#allocation110_spill] sm:$0xff]  ;;  %v3806_v52 = vrot.slane %v3805_v46, 7 }
  0x82   :  { %3777 = vst [vmem:[#allocation167_spill] sm:$0xff] %v2073_v51  ;;  %3779 = vst [vmem:[#allocation168_spill] sm:$0xff] %v2078_v6  ;;  %v2093_v60 = vsub.f32 %v3785_v11, %v3784_v4  ;;  %v3788_v51 = vld [vmem:[#allocation112_spill] sm:$0xff]  ;;  %v3791_v6 = vrot.slane %v3790_v16, 7  ;;  %v3792_v28 = vld [vmem:[#allocation114_spill] sm:$0xff]  ;;  %v3809_v4 = vrot.slane %v3694_v15, 1 }
  0x83   :  { %3781 = vst [vmem:[#allocation169_spill] sm:$0xff] %v2083_v10  ;;  %3783 = vst [vmem:[#allocation170_spill] sm:$0xff] %v2088_v38  ;;  %v2098_v30 = vsub.f32 %v3788_v51, %v3787_v53  ;;  %v3794_v10 = vld [vmem:[#allocation13_spill] sm:$0xff]  ;;  %v3795_v38 = vld [vmem:[#allocation15_spill] sm:$0xff]  ;;  %v3813_v53 = vrot.slane %v3698_v5, 1 }
  0x84   :  { %3786 = vst [vmem:[#allocation171_spill] sm:$0xff] %v2093_v60  ;;  %v2103_v48 = vsub.f32 %v3792_v28, %v3791_v6  ;;  %v485_v2 = vrot.slane %v3794_v10, 1  ;;  %v488_v56 = vrot.slane %v3795_v38, 1  ;;  %v3796_v11 = vld [vmem:[#allocation18_spill] sm:$0xff]  ;;  %v3797_v51 = vld [vmem:[#allocation19_spill] sm:$0xff]  ;;  %v3798_v6 = vld [vmem:[#allocation21_spill] sm:$0xff] }
  0x85   :  { %3789 = vst [vmem:[#allocation172_spill] sm:$0xff] %v2098_v30  ;;  %v491_v60 = vrot.slane %v3796_v11, 1  ;;  %v494_v30 = vrot.slane %v3797_v51, 1  ;;  %v497_v28 = vrot.slane %v3798_v6, 1  ;;  %v503_v38 = vrot.slane %v3800_v14, 1  ;;  %v3826_v5 = vld [vmem:[#allocation71_spill] sm:$0xff] }
  0x86   :  { %3793 = vst [vmem:[#allocation106_spill] sm:$0xff] %v2103_v48  ;;  %v3799_v48 = vld [vmem:[#allocation22_spill] sm:$0xff]  ;;  %v506_v11 = vrot.slane %v3801_v25, 1  ;;  %v509_v51 = vrot.slane %v3802_v36, 1  ;;  %v512_v6 = vrot.slane %v3803_v19, 1  ;;  %v2130_v14 = vsub.f32 %v3807_v26, %v3806_v52  ;;  %v3818_v26 = vld [vmem:[#allocation40_spill] sm:$0xff] }
  0x87   :  { %v500_v10 = vrot.slane %v3799_v48, 1  ;;  %v515_v48 = vrot.slane %v3804_v63, 1  ;;  %v2135_v25 = vsel %vm483_vm0, %v3809_v4, %v485_v2  ;;  %v3810_v36 = vrot.slane %v3695_v59, 1  ;;  %v3829_v59 = vld [vmem:[#allocation81_spill] sm:$0xff]  ;;  %v3830_v15 = vld [vmem:[#allocation82_spill] sm:$0xff] }
  0x88   :  { %3808 = vst [vmem:[#allocation13_spill] sm:$0xff] %v2130_v14  ;;  %v3811_v19 = vrot.slane %v3696_v0, 1  ;;  %v3812_v63 = vrot.slane %v3697_v40, 1  ;;  %v2155_v2 = vsel %vm483_vm0, %v3813_v53, %v497_v28  ;;  %v3814_v4 = vrot.slane %v3699_v21, 1  ;;  %v3827_v40 = vld [vmem:[#allocation72_spill] sm:$0xff]  ;;  %v3828_v0 = vld [vmem:[#allocation73_spill] sm:$0xff] }
  0x89   :  { %v2140_v8 = vsel %vm483_vm0, %v3810_v36, %v488_v56  ;;  %v3815_v36 = vrot.slane %v3700_v12, 1  ;;  %v3831_v14 = vld [vmem:[#allocation83_spill] sm:$0xff] }
  0x8a   :  { %v2145_v47 = vsel %vm483_vm0, %v3811_v19, %v491_v60  ;;  %v2150_v52 = vsel %vm483_vm0, %v3812_v63, %v494_v30  ;;  %v2160_v56 = vsel %vm483_vm0, %v3814_v4, %v500_v10  ;;  %v3816_v19 = vrot.slane %v3701_v42, 1  ;;  %v3823_v42 = vld [vmem:[#allocation51_spill] sm:$0xff] }
  0x8b   :  { %v2165_v60 = vsel %vm483_vm0, %v3815_v36, %v503_v38  ;;  %v3817_v63 = vrot.slane %v3607_v27, 1  ;;  %v518_v10 = vrot.slane %v3818_v26, 1  ;;  %v3819_v4 = vrot.slane %v3611_v49, 1 }
  0x8c   :  { %v2170_v30 = vsel %vm483_vm0, %v3816_v19, %v506_v11  ;;  %v3820_v38 = vrot.slane %v3615_v35, 1  ;;  %v3821_v19 = vld [vmem:[#allocation48_spill] sm:$0xff]  ;;  %v527_v49 = vrot.slane %v3823_v42, 1  ;;  %v542_v42 = vrot.slane %v3828_v0, 1 }
  0x8d   :  { %v2175_v28 = vsel %vm483_vm0, %v3817_v63, %v509_v51  ;;  %v2182_v12 = vsel %vm483_vm0, %v3819_v4, %v512_v6  ;;  %v521_v27 = vrot.slane %v3821_v19, 1  ;;  %v3822_v63 = vld [vmem:[#allocation49_spill] sm:$0xff]  ;;  %v3824_v4 = vld [vmem:[#allocation59_spill] sm:$0xff]  ;;  %v536_v19 = vrot.slane %v3826_v5, 1 }
  0x8e   :  { %v2187_v36 = vsel %vm483_vm0, %v3820_v38, %v515_v48  ;;  %v524_v53 = vrot.slane %v3822_v63, 1  ;;  %v530_v21 = vrot.slane %v3824_v4, 1  ;;  %v3825_v48 = vld [vmem:[#allocation70_spill] sm:$0xff]  ;;  %v539_v63 = vrot.slane %v3827_v40, 1 }
  0x8f   :  { %v533_v38 = vrot.slane %v3825_v48, 1  ;;  %v545_v4 = vrot.slane %v3829_v59, 1  ;;  %v548_v48 = vrot.slane %v3830_v15, 1  ;;  %v551_v5 = vrot.slane %v3831_v14, 1 }
  0x90   :  { %v3832_v51 = vrot.slane %v3619_v3, 1  ;;  %v3833_v26 = vrot.slane %v3702_v33, 1  ;;  %v3834_v6 = vrot.slane %v3703_v41, 1  ;;  %v3835_v35 = vrot.slane %v3704_v7, 1  ;;  %v3853_v7 = vld [vmem:[#allocation108_spill] sm:$0xff]  ;;  %v3854_v41 = vld [vmem:[#allocation109_spill] sm:$0xff] }
  0x91   :  { %v3836_v11 = vrot.slane %v3705_v31, 1  ;;  %v3837_v3 = vrot.slane %v1402_v50, 1  ;;  %v3842_v50 = vld [vmem:[#allocation84_spill] sm:$0xff]  ;;  %v3852_v31 = vld [vmem:[#allocation103_spill] sm:$0xff] }
  0x92   :  { %v519_v40 = vsel %vm483_vm0, %v3832_v51, %v518_v10  ;;  %v522_v0 = vsel %vm483_vm0, %v3833_v26, %v521_v27  ;;  %v525_v59 = vsel %vm483_vm0, %v3834_v6, %v524_v53  ;;  %v528_v15 = vsel %vm483_vm0, %v3835_v35, %v527_v49  ;;  %v3855_v33 = vld [vmem:[#allocation111_spill] sm:$0xff] }
  0x93   :  { %v531_v14 = vsel %vm483_vm0, %v3836_v11, %v530_v21  ;;  %v534_v10 = vsel %vm483_vm0, %v3837_v3, %v533_v38  ;;  %v3838_v51 = vrot.slane %v3706_v32, 1  ;;  %v3839_v26 = vrot.slane %v3707_v54, 1  ;;  %v3847_v11 = vld [vmem:[#allocation93_spill] sm:$0xff]  ;;  %v3848_v54 = vld [vmem:[#allocation94_spill] sm:$0xff] }
  0x94   :  { %v3840_v6 = vrot.slane %v3708_v34, 1  ;;  %v3841_v35 = vrot.slane %v3637_v55, 1  ;;  %v554_v3 = vrot.slane %v3842_v50, 1  ;;  %v3843_v38 = vrot.slane %v3639_v9, 1  ;;  %v3845_v34 = vld [vmem:[#allocation91_spill] sm:$0xff]  ;;  %v3846_v55 = vld [vmem:[#allocation92_spill] sm:$0xff] }
  0x95   :  { %v537_v27 = vsel %vm483_vm0, %v3838_v51, %v536_v19  ;;  %v540_v53 = vsel %vm483_vm0, %v3839_v26, %v539_v63  ;;  %v3844_v51 = vrot.slane %v3641_v62, 1  ;;  %v563_v50 = vrot.slane %v3847_v11, 1  ;;  %v3849_v62 = vld [vmem:[#allocation100_spill] sm:$0xff]  ;;  %v3850_v26 = vld [vmem:[#allocation101_spill] sm:$0xff]  ;;  %v3851_v32 = vld [vmem:[#allocation102_spill] sm:$0xff] }
  0x96   :  { %v543_v49 = vsel %vm483_vm0, %v3840_v6, %v542_v42  ;;  %v546_v21 = vsel %vm483_vm0, %v3841_v35, %v545_v4  ;;  %v549_v19 = vsel %vm483_vm0, %v3843_v38, %v548_v48  ;;  %v557_v42 = vrot.slane %v3845_v34, 1 }
  0x97   :  { %v552_v63 = vsel %vm483_vm0, %v3844_v51, %v551_v5  ;;  %v560_v4 = vrot.slane %v3846_v55, 1  ;;  %v566_v48 = vrot.slane %v3848_v54, 1  ;;  %v569_v5 = vrot.slane %v3849_v62, 1 }
  0x98   :  { %v572_v34 = vrot.slane %v3850_v26, 1  ;;  %v575_v55 = vrot.slane %v3851_v32, 1  ;;  %v578_v11 = vrot.slane %v3852_v31, 1  ;;  %v581_v54 = vrot.slane %v3853_v7, 1 }
  0x99   :  { %v584_v62 = vrot.slane %v3854_v41, 1  ;;  %v587_v26 = vrot.slane %v3855_v33, 1  ;;  %v3856_v6 = vrot.slane %v3643_v24, 1  ;;  %v3857_v35 = vrot.slane %v3653_v44, 1 }
  0x9a   :  { %v590_v7 = vrot.slane %v3858_v18, 1  ;;  %v3859_v38 = vrot.slane %v3655_v20, 1  ;;  %v3860_v51 = vrot.slane %v3657_v39, 1  ;;  %v3861_v24 = vrot.slane %v3659_v61, 1 }
  0x9b   :  { %v555_v32 = vsel %vm483_vm0, %v3856_v6, %v554_v3  ;;  %v558_v31 = vsel %vm483_vm0, %v3857_v35, %v557_v42  ;;  %v3862_v6 = vrot.slane %v3586_v13, 1  ;;  %v3863_v35 = vrot.slane %v3588_v23, 1 }
  0x9c   :  { %v561_v41 = vsel %vm483_vm0, %v3859_v38, %v560_v4  ;;  %v564_v33 = vsel %vm483_vm0, %v3860_v51, %v563_v50  ;;  %v567_v3 = vsel %vm483_vm0, %v3861_v24, %v566_v48  ;;  %v3864_v9 = vrot.slane %v3590_v57, 1 }
  0x9d   :  { %v570_v42 = vsel %vm483_vm0, %v3862_v6, %v569_v5  ;;  %v573_v18 = vsel %vm483_vm0, %v3863_v35, %v572_v34  ;;  %v3865_v38 = vrot.slane %v3671_v1, 1  ;;  %v3866_v51 = vrot.slane %v3678_v22, 1  ;;  %v3869_v35 = vld [vmem:[#allocation144_spill] sm:$0xff] }
  0x9e   :  { %v576_v4 = vsel %vm483_vm0, %v3864_v9, %v575_v55  ;;  %v3867_v48 = vrot.slane %v3680_v45, 1  ;;  %v3868_v6 = vrot.slane %v3790_v16, 1  ;;  %v2311_v57 = vsub.f32 %v3869_v35, %v2135_v25  ;;  %v3870_v9 = vld [vmem:[#allocation145_spill] sm:$0xff]  ;;  %v3876_v35 = vld [vmem:[#allocation150_spill] sm:$0xff] }
  0x9f   :  { %v579_v50 = vsel %vm483_vm0, %v3865_v38, %v578_v11  ;;  %v582_v24 = vsel %vm483_vm0, %v3866_v51, %v581_v54  ;;  %v2315_v55 = vsub.f32 %v3870_v9, %v2140_v8  ;;  %v3871_v11 = vrot.slane %v3805_v46, 1  ;;  %v3872_v38 = vld [vmem:[#allocation146_spill] sm:$0xff] }
  0xa0   :  { %v585_v5 = vsel %vm483_vm0, %v3867_v48, %v584_v62  ;;  %v588_v34 = vsel %vm483_vm0, %v3868_v6, %v587_v26  ;;  %v2322_v51 = vsub.f32 %v3872_v38, %v2145_v47  ;;  %v3873_v62 = vld [vmem:[#allocation147_spill] sm:$0xff]  ;;  %v3874_v26 = vld [vmem:[#allocation148_spill] sm:$0xff]  ;;  %v3875_v6 = vld [vmem:[#allocation149_spill] sm:$0xff]  ;;  %v2338_v9 = vsub.f32 %v3876_v35, %v2165_v60 }
  0xa1   :  { %v591_v54 = vsel %vm483_vm0, %v3871_v11, %v590_v7  ;;  %v2326_v48 = vsub.f32 %v3873_v62, %v2150_v52  ;;  %v2330_v25 = vsub.f32 %v3874_v26, %v2155_v2  ;;  %v2334_v8 = vsub.f32 %v3875_v6, %v2160_v56  ;;  %v3877_v7 = vld [vmem:[#allocation151_spill] sm:$0xff]  ;;  %v3878_v11 = vld [vmem:[#allocation152_spill] sm:$0xff]  ;;  %v3879_v38 = vld [vmem:[#allocation153_spill] sm:$0xff] }
  0xa2   :  { %v2342_v47 = vsub.f32 %v3877_v7, %v2170_v30  ;;  %v2346_v52 = vsub.f32 %v3878_v11, %v2175_v28  ;;  %v2350_v2 = vsub.f32 %v3879_v38, %v2182_v12  ;;  %v3880_v62 = vld [vmem:[#allocation154_spill] sm:$0xff]  ;;  %v2357_v26 = vsub.f32 %v1988_v58, %v519_v40  ;;  %v3885_v12 = vld [vmem:[#allocation155_spill] sm:$0xff]  ;;  %v3889_v58 = vld [vmem:[#allocation157_spill] sm:$0xff] }
  0xa3   :  { %v2354_v56 = vsub.f32 %v3880_v62, %v2187_v36  ;;  %v2360_v60 = vsub.f32 %v1993_v17, %v522_v0  ;;  %v2363_v30 = vsub.f32 %v1998_v43, %v525_v59  ;;  %v2366_v28 = vsub.f32 %v2003_v37, %v528_v15  ;;  %v3887_v36 = vld [vmem:[#allocation156_spill] sm:$0xff]  ;;  %v3891_v17 = vld [vmem:[#allocation158_spill] sm:$0xff]  ;;  %v3893_v43 = vld [vmem:[#allocation159_spill] sm:$0xff] }
  0xa4   :  { %v2369_v6 = vsub.f32 %v2008_v29, %v531_v14  ;;  %v2372_v35 = vsub.f32 %v3885_v12, %v534_v10  ;;  %v2375_v7 = vsub.f32 %v3887_v36, %v537_v27  ;;  %v2378_v40 = vsub.f32 %v3889_v58, %v540_v53  ;;  %v3895_v37 = vld [vmem:[#allocation160_spill] sm:$0xff]  ;;  %v3897_v29 = vld [vmem:[#allocation161_spill] sm:$0xff]  ;;  %v3899_v10 = vld [vmem:[#allocation162_spill] sm:$0xff] }
  0xa5   :  { %3881 = vst [vmem:[#allocation15_spill] sm:$0xff] %v2360_v60  ;;  %3882 = vst [vmem:[#allocation18_spill] sm:$0xff] %v2363_v30  ;;  %v2381_v0 = vsub.f32 %v3891_v17, %v543_v49  ;;  %v2384_v59 = vsub.f32 %v3893_v43, %v546_v21  ;;  %v2387_v15 = vsub.f32 %v3895_v37, %v549_v19  ;;  %v3901_v27 = vld [vmem:[#allocation163_spill] sm:$0xff]  ;;  %v3903_v53 = vld [vmem:[#allocation164_spill] sm:$0xff] }
  0xa6   :  { %3883 = vst [vmem:[#allocation19_spill] sm:$0xff] %v2366_v28  ;;  %3884 = vst [vmem:[#allocation37_spill] sm:$0xff] %v2369_v6  ;;  %v2390_v14 = vsub.f32 %v3897_v29, %v552_v63  ;;  %v2393_v11 = vsub.f32 %v3899_v10, %v555_v32  ;;  %v2396_v38 = vsub.f32 %v3901_v27, %v558_v31  ;;  %v3905_v49 = vld [vmem:[#allocation165_spill] sm:$0xff]  ;;  %v3907_v21 = vld [vmem:[#allocation166_spill] sm:$0xff] }
  0xa7   :  { %3886 = vst [vmem:[#allocation38_spill] sm:$0xff] %v2372_v35  ;;  %3888 = vst [vmem:[#allocation39_spill] sm:$0xff] %v2375_v7  ;;  %v2399_v62 = vsub.f32 %v3903_v53, %v561_v41  ;;  %v2402_v12 = vsub.f32 %v3905_v49, %v564_v33  ;;  %v2405_v36 = vsub.f32 %v3907_v21, %v567_v3  ;;  %v3909_v19 = vld [vmem:[#allocation167_spill] sm:$0xff]  ;;  %v3911_v63 = vld [vmem:[#allocation168_spill] sm:$0xff] }
  0xa8   :  { %3890 = vst [vmem:[#allocation107_spill] sm:$0xff] %v2378_v40  ;;  %3892 = vst [vmem:[#allocation40_spill] sm:$0xff] %v2381_v0  ;;  %v2408_v58 = vsub.f32 %v3909_v19, %v570_v42  ;;  %v2411_v17 = vsub.f32 %v3911_v63, %v573_v18  ;;  %v3913_v32 = vld [vmem:[#allocation169_spill] sm:$0xff]  ;;  %v3915_v31 = vld [vmem:[#allocation170_spill] sm:$0xff] }
  0xa9   :  { %3894 = vst [vmem:[#allocation48_spill] sm:$0xff] %v2384_v59  ;;  %3896 = vst [vmem:[#allocation49_spill] sm:$0xff] %v2387_v15  ;;  %v2414_v43 = vsub.f32 %v3913_v32, %v576_v4  ;;  %v2417_v37 = vsub.f32 %v3915_v31, %v579_v50  ;;  %v3917_v41 = vld [vmem:[#allocation171_spill] sm:$0xff]  ;;  %v3919_v33 = vld [vmem:[#allocation172_spill] sm:$0xff] }
  0xaa   :  { %3898 = vst [vmem:[#allocation51_spill] sm:$0xff] %v2390_v14  ;;  %3900 = vst [vmem:[#allocation59_spill] sm:$0xff] %v2393_v11  ;;  %v2420_v29 = vsub.f32 %v3917_v41, %v582_v24  ;;  %v2423_v10 = vsub.f32 %v3919_v33, %v585_v5  ;;  %v3921_v3 = vld [vmem:[#allocation106_spill] sm:$0xff]  ;;  %v3923_v42 = vld [vmem:[#allocation13_spill] sm:$0xff] }
  0xab   :  { %3902 = vst [vmem:[#allocation70_spill] sm:$0xff] %v2396_v38  ;;  %3904 = vst [vmem:[#allocation71_spill] sm:$0xff] %v2399_v62  ;;  %v2426_v27 = vsub.f32 %v3921_v3, %v588_v34  ;;  %v2429_v53 = vsub.f32 %v3923_v42, %v591_v54  ;;  %v3925_v18 = vld [vmem:[#allocation9_spill] sm:$0xff]  ;;  %v3929_v19 = vld [vmem:[#allocation10_spill] sm:$0xff] }
  0xac   :  { %3906 = vst [vmem:[#allocation72_spill] sm:$0xff] %v2402_v12  ;;  %3908 = vst [vmem:[#allocation73_spill] sm:$0xff] %v2405_v36  ;;  %v3926_v49 = vrot.slane %v3925_v18, 1  ;;  %v3927_v21 = vld [vmem:[#allocation25_spill] sm:$0xff]  ;;  %v3930_v50 = vrot.slane %v3929_v19, 1  ;;  %v3931_v63 = vld [vmem:[#allocation30_spill] sm:$0xff] }
  0xad   :  { %3910 = vst [vmem:[#allocation81_spill] sm:$0xff] %v2408_v58  ;;  %3912 = vst [vmem:[#allocation82_spill] sm:$0xff] %v2411_v17  ;;  %v3933_v24 = vld [vmem:[#allocation11_spill] sm:$0xff]  ;;  %v3935_v5 = vld [vmem:[#allocation34_spill] sm:$0xff] }
  0xae   :  { %3914 = vst [vmem:[#allocation83_spill] sm:$0xff] %v2414_v43  ;;  %3916 = vst [vmem:[#allocation84_spill] sm:$0xff] %v2417_v37  ;;  %v2434_v4 = vsub.f32 %v3927_v21, %v3926_v49  ;;  %v2439_v32 = vsub.f32 %v3931_v63, %v3930_v50  ;;  %v3934_v31 = vrot.slane %v3933_v24, 1  ;;  %v3937_v34 = vld [vmem:[#allocation12_spill] sm:$0xff]  ;;  %v3939_v3 = vld [vmem:[#allocation35_spill] sm:$0xff] }
  0xaf   :  { %3918 = vst [vmem:[#allocation91_spill] sm:$0xff] %v2420_v29  ;;  %3920 = vst [vmem:[#allocation92_spill] sm:$0xff] %v2423_v10  ;;  %v3938_v33 = vrot.slane %v3937_v34, 1  ;;  %v3941_v42 = vld [vmem:[#allocation14_spill] sm:$0xff]  ;;  %v3945_v21 = vld [vmem:[#allocation16_spill] sm:$0xff] }
  0xb0   :  { %3922 = vst [vmem:[#allocation93_spill] sm:$0xff] %v2426_v27  ;;  %3924 = vst [vmem:[#allocation94_spill] sm:$0xff] %v2429_v53  ;;  %v2444_v41 = vsub.f32 %v3935_v5, %v3934_v31  ;;  %v3942_v53 = vrot.slane %v3941_v42, 1  ;;  %v3943_v27 = vld [vmem:[#allocation43_spill] sm:$0xff]  ;;  %v3947_v10 = vld [vmem:[#allocation44_spill] sm:$0xff] }
  0xb1   :  { %3928 = vst [vmem:[#allocation108_spill] sm:$0xff] %v2434_v4  ;;  %3932 = vst [vmem:[#allocation109_spill] sm:$0xff] %v2439_v32  ;;  %v2449_v54 = vsub.f32 %v3939_v3, %v3938_v33  ;;  %v3946_v4 = vrot.slane %v3945_v21, 1  ;;  %v3949_v63 = vld [vmem:[#allocation17_spill] sm:$0xff]  ;;  %v3953_v5 = vld [vmem:[#allocation20_spill] sm:$0xff] }
  0xb2   :  { %3936 = vst [vmem:[#allocation111_spill] sm:$0xff] %v2444_v41  ;;  %v2454_v49 = vsub.f32 %v3943_v27, %v3942_v53  ;;  %v3950_v32 = vrot.slane %v3949_v63, 1  ;;  %v3951_v29 = vld [vmem:[#allocation45_spill] sm:$0xff]  ;;  %v3954_v41 = vrot.slane %v3953_v5, 1  ;;  %v3955_v37 = vld [vmem:[#allocation50_spill] sm:$0xff]  ;;  %v3957_v3 = vld [vmem:[#allocation27_spill] sm:$0xff] }
  0xb3   :  { %3940 = vst [vmem:[#allocation113_spill] sm:$0xff] %v2449_v54  ;;  %v2459_v50 = vsub.f32 %v3947_v10, %v3946_v4  ;;  %v3958_v54 = vrot.slane %v3957_v3, 1  ;;  %v3959_v43 = vld [vmem:[#allocation78_spill] sm:$0xff]  ;;  %v3961_v53 = vld [vmem:[#allocation31_spill] sm:$0xff]  ;;  %v3965_v4 = vld [vmem:[#allocation32_spill] sm:$0xff] }
  0xb4   :  { %3944 = vst [vmem:[#allocation144_spill] sm:$0xff] %v2454_v49  ;;  %v2464_v31 = vsub.f32 %v3951_v29, %v3950_v32  ;;  %v2469_v33 = vsub.f32 %v3955_v37, %v3954_v41  ;;  %v3962_v49 = vrot.slane %v3961_v53, 1  ;;  %v3963_v17 = vld [vmem:[#allocation79_spill] sm:$0xff]  ;;  %v3967_v58 = vld [vmem:[#allocation80_spill] sm:$0xff]  ;;  %v3973_v41 = vld [vmem:[#allocation41_spill] sm:$0xff] }
  0xb5   :  { %3948 = vst [vmem:[#allocation145_spill] sm:$0xff] %v2459_v50  ;;  %v2474_v27 = vsub.f32 %v3959_v43, %v3958_v54  ;;  %v3966_v50 = vrot.slane %v3965_v4, 1  ;;  %v3969_v32 = vld [vmem:[#allocation36_spill] sm:$0xff]  ;;  %v3975_v12 = vld [vmem:[#allocation53_spill] sm:$0xff]  ;;  %v3977_v54 = vld [vmem:[#allocation42_spill] sm:$0xff] }
  0xb6   :  { %3952 = vst [vmem:[#allocation146_spill] sm:$0xff] %v2464_v31  ;;  %3956 = vst [vmem:[#allocation147_spill] sm:$0xff] %v2469_v33  ;;  %v2479_v10 = vsub.f32 %v3963_v17, %v3962_v49  ;;  %v3970_v31 = vrot.slane %v3969_v32, 1  ;;  %v3971_v36 = vld [vmem:[#allocation88_spill] sm:$0xff]  ;;  %v3974_v33 = vrot.slane %v3973_v41, 1  ;;  %v3979_v62 = vld [vmem:[#allocation54_spill] sm:$0xff] }
  0xb7   :  { %3960 = vst [vmem:[#allocation148_spill] sm:$0xff] %v2474_v27  ;;  %v2484_v29 = vsub.f32 %v3967_v58, %v3966_v50  ;;  %v3978_v27 = vrot.slane %v3977_v54, 1  ;;  %v3981_v49 = vld [vmem:[#allocation46_spill] sm:$0xff]  ;;  %v3983_v38 = vld [vmem:[#allocation55_spill] sm:$0xff]  ;;  %v3987_v11 = vld [vmem:[#allocation56_spill] sm:$0xff] }
  0xb8   :  { %3964 = vst [vmem:[#allocation149_spill] sm:$0xff] %v2479_v10  ;;  %v2489_v37 = vsub.f32 %v3971_v36, %v3970_v31  ;;  %v2494_v43 = vsub.f32 %v3975_v12, %v3974_v33  ;;  %v3982_v10 = vrot.slane %v3981_v49, 1  ;;  %v3985_v50 = vld [vmem:[#allocation47_spill] sm:$0xff]  ;;  %v3989_v31 = vld [vmem:[#allocation60_spill] sm:$0xff]  ;;  %v3999_v59 = vld [vmem:[#allocation121_spill] sm:$0xff] }
  0xb9   :  { %3968 = vst [vmem:[#allocation150_spill] sm:$0xff] %v2484_v29  ;;  %v2499_v17 = vsub.f32 %v3979_v62, %v3978_v27  ;;  %v3986_v29 = vrot.slane %v3985_v50, 1  ;;  %v3991_v14 = vld [vmem:[#allocation119_spill] sm:$0xff]  ;;  %v3993_v33 = vld [vmem:[#allocation64_spill] sm:$0xff]  ;;  %v3997_v27 = vld [vmem:[#allocation65_spill] sm:$0xff] }
  0xba   :  { %3972 = vst [vmem:[#allocation151_spill] sm:$0xff] %v2489_v37  ;;  %3976 = vst [vmem:[#allocation152_spill] sm:$0xff] %v2494_v43  ;;  %v2504_v58 = vsub.f32 %v3983_v38, %v3982_v10  ;;  %v3990_v37 = vrot.slane %v3989_v31, 1  ;;  %v3994_v43 = vrot.slane %v3993_v33, 1  ;;  %v3995_v15 = vld [vmem:[#allocation120_spill] sm:$0xff]  ;;  %v4001_v10 = vld [vmem:[#allocation66_spill] sm:$0xff] }
  0xbb   :  { %3980 = vst [vmem:[#allocation153_spill] sm:$0xff] %v2499_v17  ;;  %v2509_v36 = vsub.f32 %v3987_v11, %v3986_v29  ;;  %v3998_v17 = vrot.slane %v3997_v27, 1  ;;  %v4003_v0 = vld [vmem:[#allocation122_spill] sm:$0xff]  ;;  %v4007_v40 = vld [vmem:[#allocation85_spill] sm:$0xff]  ;;  %v4015_v35 = vld [vmem:[#allocation87_spill] sm:$0xff] }
  0xbc   :  { %3984 = vst [vmem:[#allocation154_spill] sm:$0xff] %v2504_v58  ;;  %v2514_v12 = vsub.f32 %v3991_v14, %v3990_v37  ;;  %v2519_v62 = vsub.f32 %v3995_v15, %v3994_v43  ;;  %v4002_v58 = vrot.slane %v4001_v10, 1  ;;  %v4005_v29 = vld [vmem:[#allocation74_spill] sm:$0xff]  ;;  %v4009_v37 = vld [vmem:[#allocation75_spill] sm:$0xff]  ;;  %v4013_v43 = vld [vmem:[#allocation76_spill] sm:$0xff] }
  0xbd   :  { %3988 = vst [vmem:[#allocation155_spill] sm:$0xff] %v2509_v36  ;;  %v2524_v38 = vsub.f32 %v3999_v59, %v3998_v17  ;;  %v4006_v36 = vrot.slane %v4005_v29, 1  ;;  %v4011_v7 = vld [vmem:[#allocation86_spill] sm:$0xff]  ;;  %v4017_v17 = vld [vmem:[#allocation77_spill] sm:$0xff] }
  0xbe   :  { %3992 = vst [vmem:[#allocation156_spill] sm:$0xff] %v2514_v12  ;;  %3996 = vst [vmem:[#allocation157_spill] sm:$0xff] %v2519_v62  ;;  %v2529_v11 = vsub.f32 %v4003_v0, %v4002_v58  ;;  %v4010_v12 = vrot.slane %v4009_v37, 1  ;;  %v4014_v62 = vrot.slane %v4013_v43, 1  ;;  %v4019_v6 = vld [vmem:[#allocation90_spill] sm:$0xff]  ;;  %v4021_v58 = vrot.slane %v3653_v44, 1 }
  0xbf   :  { %4000 = vst [vmem:[#allocation158_spill] sm:$0xff] %v2524_v38  ;;  %v2534_v14 = vsub.f32 %v4007_v40, %v4006_v36  ;;  %v4018_v38 = vrot.slane %v4017_v17, 1  ;;  %v4024_v36 = vrot.slane %v3655_v20, 1  ;;  %v4041_v28 = vld [vmem:[#allocation138_spill] sm:$0xff] }
  0xc0   :  { %4004 = vst [vmem:[#allocation159_spill] sm:$0xff] %v2529_v11  ;;  %v2539_v15 = vsub.f32 %v4011_v7, %v4010_v12  ;;  %v2544_v59 = vsub.f32 %v4015_v35, %v4014_v62  ;;  %v4022_v11 = vld [vmem:[#allocation131_spill] sm:$0xff]  ;;  %v4027_v12 = vrot.slane %v3657_v39, 1  ;;  %v4030_v62 = vrot.slane %v3659_v61, 1 }
  0xc1   :  { %4008 = vst [vmem:[#allocation160_spill] sm:$0xff] %v2534_v14  ;;  %v2549_v0 = vsub.f32 %v4019_v6, %v4018_v38  ;;  %v2554_v40 = vsub.f32 %v4022_v11, %v4021_v58  ;;  %v4025_v14 = vld [vmem:[#allocation132_spill] sm:$0xff]  ;;  %v4033_v38 = vrot.slane %v3586_v13, 1  ;;  %v4036_v58 = vrot.slane %v3588_v23, 1 }
  0xc2   :  { %4012 = vst [vmem:[#allocation161_spill] sm:$0xff] %v2539_v15  ;;  %4016 = vst [vmem:[#allocation162_spill] sm:$0xff] %v2544_v59  ;;  %v2559_v7 = vsub.f32 %v4025_v14, %v4024_v36  ;;  %v4028_v15 = vld [vmem:[#allocation133_spill] sm:$0xff]  ;;  %v4031_v59 = vld [vmem:[#allocation99_spill] sm:$0xff] }
  0xc3   :  { %4020 = vst [vmem:[#allocation163_spill] sm:$0xff] %v2549_v0  ;;  %4023 = vst [vmem:[#allocation164_spill] sm:$0xff] %v2554_v40  ;;  %v2564_v35 = vsub.f32 %v4028_v15, %v4027_v12  ;;  %v2569_v6 = vsub.f32 %v4031_v59, %v4030_v62  ;;  %v4034_v0 = vld [vmem:[#allocation104_spill] sm:$0xff]  ;;  %v4037_v40 = vld [vmem:[#allocation105_spill] sm:$0xff]  ;;  %v4043_v12 = vrot.slane %v3671_v1, 1  ;;  %v4046_v62 = vrot.slane %v3678_v22, 1 }
  0xc4   :  { %4026 = vst [vmem:[#allocation165_spill] sm:$0xff] %v2559_v7  ;;  %v2574_v11 = vsub.f32 %v4034_v0, %v4033_v38  ;;  %v2579_v14 = vsub.f32 %v4037_v40, %v4036_v58  ;;  %v4039_v36 = vld [vmem:[#allocation98_spill] sm:$0xff]  ;;  %v4049_v38 = vrot.slane %v3680_v45, 1  ;;  %v4052_v58 = vrot.slane %v3790_v16, 1 }
  0xc5   :  { %4029 = vst [vmem:[#allocation166_spill] sm:$0xff] %v2564_v35  ;;  %4032 = vst [vmem:[#allocation167_spill] sm:$0xff] %v2569_v6  ;;  %v4040_v7 = vrot.slane %v4039_v36, 1  ;;  %v4044_v35 = vld [vmem:[#allocation139_spill] sm:$0xff]  ;;  %v4047_v6 = vld [vmem:[#allocation110_spill] sm:$0xff] }
  0xc6   :  { %4035 = vst [vmem:[#allocation168_spill] sm:$0xff] %v2574_v11  ;;  %4038 = vst [vmem:[#allocation169_spill] sm:$0xff] %v2579_v14  ;;  %v2589_v59 = vsub.f32 %v4044_v35, %v4043_v12  ;;  %v2594_v0 = vsub.f32 %v4047_v6, %v4046_v62  ;;  %v4050_v11 = vld [vmem:[#allocation112_spill] sm:$0xff]  ;;  %v4053_v14 = vld [vmem:[#allocation114_spill] sm:$0xff]  ;;  %v4058_v12 = vrot.slane %v3925_v18, 7  ;;  %v4070_v18 = vrot.slane %v3937_v34, 7 }
  0xc7   :  { %v2584_v15 = vsub.f32 %v4041_v28, %v4040_v7  ;;  %v2599_v40 = vsub.f32 %v4050_v11, %v4049_v38  ;;  %v2604_v28 = vsub.f32 %v4053_v14, %v4052_v58  ;;  %v4055_v7 = vrot.slane %v3805_v46, 1  ;;  %v4060_v6 = vld [vmem:[#allocation21_spill] sm:$0xff]  ;;  %v4063_v38 = vld [vmem:[#allocation28_spill] sm:$0xff] }
  0xc8   :  { %4045 = vst [vmem:[#allocation171_spill] sm:$0xff] %v2589_v59  ;;  %4048 = vst [vmem:[#allocation172_spill] sm:$0xff] %v2594_v0  ;;  %v4059_v59 = vld [vmem:[#allocation24_spill] sm:$0xff]  ;;  %v4062_v11 = vrot.slane %v3929_v19, 7  ;;  %v4066_v14 = vrot.slane %v3933_v24, 7  ;;  %v4067_v58 = vld [vmem:[#allocation29_spill] sm:$0xff] }
  0xc9   :  { %4042 = vst [vmem:[#allocation170_spill] sm:$0xff] %v2584_v15  ;;  %4051 = vst [vmem:[#allocation106_spill] sm:$0xff] %v2599_v40  ;;  %v4056_v15 = vld [vmem:[#allocation96_spill] sm:$0xff]  ;;  %v4061_v62 = vsub.f32 %v4059_v59, %v4060_v6  ;;  %v4064_v40 = vld [vmem:[#allocation22_spill] sm:$0xff]  ;;  %v4074_v19 = vrot.slane %v3941_v42, 7  ;;  %v4080_v34 = vrot.slane %v3953_v5, 7 }
  0xca   :  { %4054 = vst [vmem:[#allocation13_spill] sm:$0xff] %v2604_v28  ;;  %v2609_v35 = vsub.f32 %v4056_v15, %v4055_v7  ;;  %v4065_v30 = vsub.f32 %v4063_v38, %v4064_v40  ;;  %v4068_v28 = vld [vmem:[#allocation23_spill] sm:$0xff]  ;;  %v4072_v59 = vld [vmem:[#allocation26_spill] sm:$0xff]  ;;  %v4082_v42 = vrot.slane %v3957_v3, 7  ;;  %v4088_v5 = vrot.slane %v3969_v32, 7 }
  0xcb   :  { %v2616_v0 = vsub.f32 %v4061_v62, %v4058_v12  ;;  %v4069_v15 = vsub.f32 %v4067_v58, %v4068_v28  ;;  %v4075_v62 = vld [vmem:[#allocation57_spill] sm:$0xff]  ;;  %v4077_v24 = vld [vmem:[#allocation58_spill] sm:$0xff]  ;;  %v4078_v28 = vrot.slane %v3949_v63, 7  ;;  %v4079_v38 = vld [vmem:[#allocation63_spill] sm:$0xff]  ;;  %v4086_v63 = vrot.slane %v3965_v4, 7 }
  0xcc   :  { %4057 = vst [vmem:[#allocation9_spill] sm:$0xff] %v2609_v35  ;;  %v2623_v60 = vsub.f32 %v4065_v30, %v4062_v11  ;;  %v4071_v35 = vld [vmem:[#allocation33_spill] sm:$0xff]  ;;  %v2642_v40 = vsub.f32 %v4075_v62, %v4074_v19  ;;  %v4076_v30 = vrot.slane %v3945_v21, 7  ;;  %v4084_v21 = vrot.slane %v3961_v53, 7 }
  0xcd   :  { %v2630_v7 = vsub.f32 %v4069_v15, %v4066_v14  ;;  %v4073_v12 = vsub.f32 %v4071_v35, %v4072_v59  ;;  %v2652_v14 = vsub.f32 %v4079_v38, %v4078_v28  ;;  %v4081_v35 = vld [vmem:[#allocation69_spill] sm:$0xff]  ;;  %v4085_v59 = vld [vmem:[#allocation95_spill] sm:$0xff]  ;;  %v4090_v3 = vrot.slane %v3973_v41, 7 }
  0xce   :  { %v2647_v11 = vsub.f32 %v4077_v24, %v4076_v30  ;;  %v2657_v58 = vsub.f32 %v4081_v35, %v4080_v34  ;;  %v4083_v15 = vld [vmem:[#allocation89_spill] sm:$0xff]  ;;  %v4089_v30 = vld [vmem:[#allocation52_spill] sm:$0xff]  ;;  %v4092_v53 = vrot.slane %v3977_v54, 7  ;;  %v4093_v34 = vld [vmem:[#allocation62_spill] sm:$0xff]  ;;  %v4094_v4 = vrot.slane %v3981_v49, 7 }
  0xcf   :  { %v2637_v6 = vsub.f32 %v4073_v12, %v4070_v18  ;;  %v2662_v18 = vsub.f32 %v4083_v15, %v4082_v42  ;;  %v2667_v12 = vsub.f32 %v4085_v59, %v4084_v21  ;;  %v4087_v19 = vld [vmem:[#allocation97_spill] sm:$0xff]  ;;  %v2677_v24 = vsub.f32 %v4089_v30, %v4088_v5  ;;  %v4095_v42 = vld [vmem:[#allocation67_spill] sm:$0xff]  ;;  %v4097_v21 = vld [vmem:[#allocation68_spill] sm:$0xff] }
  0xd0   :  { %v2672_v62 = vsub.f32 %v4087_v19, %v4086_v63  ;;  %v4091_v28 = vld [vmem:[#allocation61_spill] sm:$0xff]  ;;  %v2687_v35 = vsub.f32 %v4093_v34, %v4092_v53  ;;  %v2692_v15 = vsub.f32 %v4095_v42, %v4094_v4  ;;  %v4096_v32 = vrot.slane %v3985_v50, 7  ;;  %v4099_v63 = vld [vmem:[#allocation123_spill] sm:$0xff]  ;;  %v4101_v5 = vld [vmem:[#allocation124_spill] sm:$0xff] }
  0xd1   :  { %v2682_v38 = vsub.f32 %v4091_v28, %v4090_v3  ;;  %v4098_v41 = vrot.slane %v3989_v31, 7  ;;  %v4100_v54 = vrot.slane %v3993_v33, 7  ;;  %v4103_v49 = vrot.slane %v3997_v27, 7  ;;  %v4104_v3 = vld [vmem:[#allocation125_spill] sm:$0xff]  ;;  %v4107_v53 = vld [vmem:[#allocation126_spill] sm:$0xff]  ;;  %v4110_v4 = vld [vmem:[#allocation127_spill] sm:$0xff] }
  0xd2   :  { %v2697_v59 = vsub.f32 %v4097_v21, %v4096_v32  ;;  %v4106_v50 = vrot.slane %v4001_v10, 7  ;;  %v4109_v31 = vrot.slane %v4005_v29, 7  ;;  %v4112_v33 = vrot.slane %v4009_v37, 7  ;;  %v4113_v32 = vld [vmem:[#allocation128_spill] sm:$0xff] }
  0xd3   :  { %v2702_v19 = vsub.f32 %v4099_v63, %v4098_v41  ;;  %v2707_v30 = vsub.f32 %v4101_v5, %v4100_v54  ;;  %v2712_v28 = vsub.f32 %v4104_v3, %v4103_v49  ;;  %v4115_v27 = vrot.slane %v4013_v43, 7  ;;  %v4116_v41 = vld [vmem:[#allocation129_spill] sm:$0xff]  ;;  %v4119_v54 = vld [vmem:[#allocation130_spill] sm:$0xff] }
  0xd4   :  { %v2717_v34 = vsub.f32 %v4107_v53, %v4106_v50  ;;  %v2722_v42 = vsub.f32 %v4110_v4, %v4109_v31  ;;  %v2727_v21 = vsub.f32 %v4113_v32, %v4112_v33  ;;  %v4118_v10 = vrot.slane %v4017_v17, 7  ;;  %v4122_v49 = vld [vmem:[#allocation134_spill] sm:$0xff]  ;;  %v4125_v50 = vld [vmem:[#allocation135_spill] sm:$0xff]  ;;  %v4128_v31 = vld [vmem:[#allocation136_spill] sm:$0xff] }
  0xd5   :  { %4102 = vst [vmem:[#allocation25_spill] sm:$0xff] %v2707_v30  ;;  %4105 = vst [vmem:[#allocation10_spill] sm:$0xff] %v2712_v28  ;;  %v2732_v63 = vsub.f32 %v4116_v41, %v4115_v27  ;;  %v4121_v29 = vrot.slane %v3653_v44, 7  ;;  %v4124_v37 = vrot.slane %v3655_v20, 7  ;;  %v4127_v43 = vrot.slane %v3657_v39, 7  ;;  %v4131_v33 = vld [vmem:[#allocation137_spill] sm:$0xff] }
  0xd6   :  { %4108 = vst [vmem:[#allocation30_spill] sm:$0xff] %v2717_v34  ;;  %4111 = vst [vmem:[#allocation11_spill] sm:$0xff] %v2722_v42  ;;  %v2737_v5 = vsub.f32 %v4119_v54, %v4118_v10  ;;  %v4130_v17 = vrot.slane %v3659_v61, 7  ;;  %v4133_v44 = vrot.slane %v3586_v13, 7  ;;  %v4134_v27 = vld [vmem:[#allocation140_spill] sm:$0xff]  ;;  %v4136_v20 = vrot.slane %v3588_v23, 7 }
  0xd7   :  { %4114 = vst [vmem:[#allocation34_spill] sm:$0xff] %v2727_v21  ;;  %4117 = vst [vmem:[#allocation12_spill] sm:$0xff] %v2732_v63  ;;  %v2742_v3 = vsub.f32 %v4122_v49, %v4121_v29  ;;  %v2747_v53 = vsub.f32 %v4125_v50, %v4124_v37  ;;  %v2752_v4 = vsub.f32 %v4128_v31, %v4127_v43  ;;  %v4137_v10 = vld [vmem:[#allocation141_spill] sm:$0xff]  ;;  %v4139_v39 = vrot.slane %v4039_v36, 7  ;;  %v4140_v29 = vld [vmem:[#allocation142_spill] sm:$0xff] }
  0xd8   :  { %4120 = vst [vmem:[#allocation35_spill] sm:$0xff] %v2737_v5  ;;  %v2757_v32 = vsub.f32 %v4131_v33, %v4130_v17  ;;  %v2762_v41 = vsub.f32 %v4134_v27, %v4133_v44  ;;  %v2767_v54 = vsub.f32 %v4137_v10, %v4136_v20  ;;  %v4142_v61 = vrot.slane %v3671_v1, 7  ;;  %v4143_v37 = vld [vmem:[#allocation143_spill] sm:$0xff]  ;;  %v4147_v31 = vld [vmem:[#allocation100_spill] sm:$0xff]  ;;  %v4152_v27 = vld [vmem:[#allocation101_spill] sm:$0xff] }
  0xd9   :  { %4123 = vst [vmem:[#allocation14_spill] sm:$0xff] %v2742_v3  ;;  %4126 = vst [vmem:[#allocation43_spill] sm:$0xff] %v2747_v53  ;;  %v2772_v49 = vsub.f32 %v4140_v29, %v4139_v39  ;;  %v4145_v13 = vrot.slane %v3678_v22, 7  ;;  %v4146_v43 = vld [vmem:[#allocation115_spill] sm:$0xff]  ;;  %v4150_v23 = vrot.slane %v3680_v45, 7  ;;  %v4151_v44 = vld [vmem:[#allocation116_spill] sm:$0xff]  ;;  %v776_v45 = vmul.f32 %v2311_v57, %v2311_v57 }
  0xda   :  { %4129 = vst [vmem:[#allocation16_spill] sm:$0xff] %v2752_v4  ;;  %4132 = vst [vmem:[#allocation44_spill] sm:$0xff] %v2757_v32  ;;  %v2777_v50 = vsub.f32 %v4143_v37, %v4142_v61  ;;  %v4148_v17 = vsub.f32 %v4146_v43, %v4147_v31  ;;  %v4153_v36 = vsub.f32 %v4151_v44, %v4152_v27  ;;  %v4155_v10 = vrot.slane %v3790_v16, 7  ;;  %v4156_v1 = vld [vmem:[#allocation117_spill] sm:$0xff]  ;;  %v4157_v39 = vld [vmem:[#allocation102_spill] sm:$0xff] }
  0xdb   :  { %4135 = vst [vmem:[#allocation17_spill] sm:$0xff] %v2762_v41  ;;  %4138 = vst [vmem:[#allocation45_spill] sm:$0xff] %v2767_v54  ;;  %v4158_v29 = vsub.f32 %v4156_v1, %v4157_v39  ;;  %v4160_v22 = vrot.slane %v3805_v46, 7  ;;  %v4161_v37 = vld [vmem:[#allocation118_spill] sm:$0xff]  ;;  %v4162_v43 = vld [vmem:[#allocation103_spill] sm:$0xff]  ;;  %v778_v16 = vmul.f32 %v2322_v51, %v2322_v51  ;;  %v780_v46 = vmul.f32 %v2330_v25, %v2330_v25 }
  0xdc   :  { %4141 = vst [vmem:[#allocation20_spill] sm:$0xff] %v2772_v49  ;;  %4144 = vst [vmem:[#allocation50_spill] sm:$0xff] %v2777_v50  ;;  %v2784_v33 = vsub.f32 %v4148_v17, %v4145_v13  ;;  %v2791_v20 = vsub.f32 %v4153_v36, %v4150_v23  ;;  %v4163_v13 = vsub.f32 %v4161_v37, %v4162_v43  ;;  %v4165_v36 = vld [vmem:[#allocation15_spill] sm:$0xff]  ;;  %v4168_v39 = vld [vmem:[#allocation37_spill] sm:$0xff] }
  0xdd   :  { %v2798_v61 = vsub.f32 %v4158_v29, %v4155_v10  ;;  %v777_v17 = vmul.f32 %v2315_v55, %v2315_v55  ;;  %v779_v23 = vmul.f32 %v2326_v48, %v2326_v48  ;;  %v781_v44 = vmul.f32 %v2334_v8, %v2334_v8  ;;  %v4166_v10 = vld [vmem:[#allocation18_spill] sm:$0xff]  ;;  %v4167_v1 = vld [vmem:[#allocation19_spill] sm:$0xff]  ;;  %v4172_v43 = vld [vmem:[#allocation40_spill] sm:$0xff] }
  0xde   :  { %4149 = vst [vmem:[#allocation27_spill] sm:$0xff] %v2784_v33  ;;  %4154 = vst [vmem:[#allocation78_spill] sm:$0xff] %v2791_v20  ;;  %v2805_v31 = vsub.f32 %v4163_v13, %v4160_v22  ;;  %v782_v27 = vmul.f32 %v2338_v9, %v2338_v9  ;;  %v783_v57 = vmul.f32 %v2342_v47, %v2342_v47  ;;  %v4169_v29 = vld [vmem:[#allocation38_spill] sm:$0xff]  ;;  %v4170_v22 = vld [vmem:[#allocation39_spill] sm:$0xff]  ;;  %v814_v41 = vsel %vm812_vm1, %v780_v46, 0.0 }
  0xdf   :  { %4159 = vst [vmem:[#allocation31_spill] sm:$0xff] %v2798_v61  ;;  %v784_v55 = vmul.f32 %v2346_v52, %v2346_v52  ;;  %v785_v51 = vmul.f32 %v2350_v2, %v2350_v2  ;;  %v786_v48 = vmul.f32 %v2354_v56, %v2354_v56  ;;  %v787_v25 = vmul.f32 %v2357_v26, %v2357_v26  ;;  %v4171_v37 = vld [vmem:[#allocation107_spill] sm:$0xff]  ;;  %v4179_v50 = vld [vmem:[#allocation72_spill] sm:$0xff]  ;;  %v4182_v32 = vld [vmem:[#allocation82_spill] sm:$0xff] }
  0xe0   :  { %4164 = vst [vmem:[#allocation79_spill] sm:$0xff] %v2805_v31  ;;  %v788_v8 = vmul.f32 %v4165_v36, %v4165_v36  ;;  %v789_v9 = vmul.f32 %v4166_v10, %v4166_v10  ;;  %v790_v47 = vmul.f32 %v4167_v1, %v4167_v1  ;;  %v791_v52 = vmul.f32 %v4168_v39, %v4168_v39  ;;  %v4173_v36 = vld [vmem:[#allocation48_spill] sm:$0xff]  ;;  %v4174_v1 = vld [vmem:[#allocation49_spill] sm:$0xff]  ;;  %v4175_v39 = vld [vmem:[#allocation51_spill] sm:$0xff] }
  0xe1   :  { %v792_v2 = vmul.f32 %v4169_v29, %v4169_v29  ;;  %v793_v56 = vmul.f32 %v4170_v22, %v4170_v22  ;;  %v794_v26 = vmul.f32 %v4171_v37, %v4171_v37  ;;  %v2847_v13 = vmul.f32 %v4172_v43, %v4172_v43  ;;  %v4176_v29 = vld [vmem:[#allocation59_spill] sm:$0xff]  ;;  %v4177_v22 = vld [vmem:[#allocation70_spill] sm:$0xff]  ;;  %v4184_v53 = vld [vmem:[#allocation84_spill] sm:$0xff] }
  0xe2   :  { %v796_v10 = vmul.f32 %v4173_v36, %v4173_v36  ;;  %v797_v31 = vmul.f32 %v4174_v1, %v4174_v1  ;;  %v798_v61 = vmul.f32 %v4175_v39, %v4175_v39  ;;  %v2857_v20 = vmul.f32 %v4176_v29, %v4176_v29  ;;  %v4178_v33 = vld [vmem:[#allocation71_spill] sm:$0xff]  ;;  %v4180_v36 = vld [vmem:[#allocation73_spill] sm:$0xff]  ;;  %v4189_v30 = vld [vmem:[#allocation108_spill] sm:$0xff] }
  0xe3   :  { %v800_v37 = vmul.f32 %v4177_v22, %v4177_v22  ;;  %v801_v43 = vmul.f32 %v4178_v33, %v4178_v33  ;;  %v802_v49 = vmul.f32 %v4179_v50, %v4179_v50  ;;  %v2867_v54 = vmul.f32 %v4180_v36, %v4180_v36  ;;  %v4181_v1 = vld [vmem:[#allocation81_spill] sm:$0xff]  ;;  %v4183_v4 = vld [vmem:[#allocation83_spill] sm:$0xff] }
  0xe4   :  { %v804_v39 = vmul.f32 %v4181_v1, %v4181_v1  ;;  %v813_v29 = vsel %vm812_vm1, %v776_v45, 0.0  ;;  %v816_v22 = vsel %vm812_vm1, %v784_v55, 0.0  ;;  %v805_v33 = vmul.f32 %v4182_v32, %v4182_v32  ;;  %v4185_v5 = vld [vmem:[#allocation91_spill] sm:$0xff]  ;;  %v4186_v55 = vld [vmem:[#allocation92_spill] sm:$0xff]  ;;  %v4187_v34 = vld [vmem:[#allocation93_spill] sm:$0xff] }
  0xe5   :  { %v806_v50 = vmul.f32 %v4183_v4, %v4183_v4  ;;  %v807_v36 = vmul.f32 %v4184_v53, %v4184_v53  ;;  %v815_v3 = vadd.f32 %v814_v41, %v813_v29  ;;  %v808_v63 = vmul.f32 %v4185_v5, %v4185_v5  ;;  %v4188_v41 = vld [vmem:[#allocation94_spill] sm:$0xff] }
  0xe6   :  { %v818_v1 = vsel %vm812_vm1, %v788_v8, 0.0  ;;  %v830_v45 = vsel %vm812_vm1, %v777_v17, 0.0  ;;  %v831_v46 = vsel %vm812_vm1, %v781_v44, 0.0  ;;  %v809_v21 = vmul.f32 %v4186_v55, %v4186_v55 }
  0xe7   :  { %v817_v32 = vadd.f32 %v816_v22, %v815_v3  ;;  %v832_v42 = vadd.f32 %v831_v46, %v830_v45  ;;  %v833_v4 = vsel %vm812_vm1, %v785_v51, 0.0  ;;  %v810_v53 = vmul.f32 %v4187_v34, %v4187_v34 }
  0xe8   :  { %v811_v29 = vmul.f32 %v4188_v41, %v4188_v41  ;;  %v820_v5 = vsel %vm812_vm1, %v792_v2, 0.0  ;;  %v835_v8 = vsel %vm812_vm1, %v789_v9, 0.0  ;;  %v847_v44 = vsel %vm812_vm1, %v778_v16, 0.0 }
  0xe9   :  { %v819_v17 = vadd.f32 %v818_v1, %v817_v32  ;;  %v834_v28 = vadd.f32 %v833_v4, %v832_v42  ;;  %v2897_v3 = vmul.f32 %v4189_v30, %v4189_v30  ;;  %v822_v51 = vsel %vm812_vm1, %v796_v10, 0.0 }
  0xea   :  { %v837_v22 = vsel %vm812_vm1, %v793_v56, 0.0  ;;  %v848_v34 = vsel %vm812_vm1, %v782_v27, 0.0  ;;  %v850_v45 = vsel %vm812_vm1, %v786_v48, 0.0  ;;  %v824_v2 = vsel %vm812_vm1, %v800_v37, 0.0 }
  0xeb   :  { %v821_v46 = vadd.f32 %v820_v5, %v819_v17  ;;  %v836_v9 = vadd.f32 %v835_v8, %v834_v28  ;;  %v849_v1 = vadd.f32 %v848_v34, %v847_v44  ;;  %v826_v42 = vsel %vm812_vm1, %v804_v39, 0.0 }
  0xec   :  { %v839_v16 = vsel %vm812_vm1, %v797_v31, 0.0  ;;  %v852_v30 = vsel %vm812_vm1, %v790_v47, 0.0  ;;  %v864_v55 = vsel %vm812_vm1, %v779_v23, 0.0  ;;  %v865_v27 = vsel %vm812_vm1, %v783_v57, 0.0 }
  0xed   :  { %v823_v10 = vadd.f32 %v822_v51, %v821_v46  ;;  %v838_v32 = vadd.f32 %v837_v22, %v836_v9  ;;  %v851_v56 = vadd.f32 %v850_v45, %v849_v1  ;;  %v841_v48 = vsel %vm812_vm1, %v801_v43, 0.0 }
  0xee   :  { %v854_v4 = vsel %vm812_vm1, %v794_v26, 0.0  ;;  %v866_v37 = vadd.f32 %v865_v27, %v864_v55  ;;  %v867_v28 = vsel %vm812_vm1, %v787_v25, 0.0  ;;  %v869_v31 = vsel %vm812_vm1, %v791_v52, 0.0  ;;  %v4193_v27 = vld [vmem:[#allocation144_spill] sm:$0xff] }
  0xef   :  { %v825_v41 = vadd.f32 %v824_v2, %v823_v10  ;;  %v840_v39 = vadd.f32 %v839_v16, %v838_v32  ;;  %v853_v5 = vadd.f32 %v852_v30, %v851_v56  ;;  %v828_v47 = vsel %vm812_vm1, %v808_v63, 0.0  ;;  %v4190_v30 = vld [vmem:[#allocation109_spill] sm:$0xff] }
  0xf0   :  { %v843_v23 = vsel %vm812_vm1, %v805_v33, 0.0  ;;  %v856_v8 = vsel %vm812_vm1, %v798_v61, 0.0  ;;  %v868_v17 = vadd.f32 %v867_v28, %v866_v37  ;;  %v871_v26 = vsel %vm812_vm1, %v2847_v13, 0.0  ;;  %v772_v33 = vld [vmem:[#allocation2] sm:$0x7f]  ;;  %v4195_v28 = vld [vmem:[#allocation146_spill] sm:$0xff] }
  0xf1   :  { %v827_v57 = vadd.f32 %v826_v42, %v825_v41  ;;  %v842_v44 = vadd.f32 %v841_v48, %v840_v39  ;;  %v855_v43 = vadd.f32 %v854_v4, %v853_v5  ;;  %v845_v25 = vsel %vm812_vm1, %v809_v21, 0.0  ;;  %v773_v42 = vld [vmem:[#allocation2 + $0x8] sm:$0x7f]  ;;  %v4192_v10 = vld [vmem:[#allocation113_spill] sm:$0xff]  ;;  %v4196_v39 = vld [vmem:[#allocation147_spill] sm:$0xff] }
  0xf2   :  { %v858_v51 = vsel %vm812_vm1, %v802_v49, 0.0  ;;  %v860_v22 = vsel %vm812_vm1, %v806_v50, 0.0  ;;  %v870_v52 = vadd.f32 %v869_v31, %v868_v17  ;;  %v873_v61 = vsel %vm812_vm1, %v2857_v20, 0.0  ;;  %v4191_v20 = vld [vmem:[#allocation111_spill] sm:$0xff]  ;;  %v4194_v4 = vld [vmem:[#allocation145_spill] sm:$0xff] }
  0xf3   :  { %v829_v34 = vadd.f32 %v828_v47, %v827_v57  ;;  %v844_v63 = vadd.f32 %v843_v23, %v842_v44  ;;  %v857_v45 = vadd.f32 %v856_v8, %v855_v43  ;;  %v862_v46 = vsel %vm812_vm1, %v810_v53, 0.0  ;;  %v4197_v23 = vld [vmem:[#allocation148_spill] sm:$0xff]  ;;  %v4198_v17 = vld [vmem:[#allocation149_spill] sm:$0xff]  ;;  %v774_v44 = vld [vmem:[#allocation2 + $0x10] sm:$0x7f] }
  0xf4   :  { %v872_v2 = vadd.f32 %v871_v26, %v870_v52  ;;  %v875_v13 = vsel %vm812_vm1, %v2867_v54, 0.0  ;;  %v877_v21 = vsel %vm812_vm1, %v807_v36, 0.0  ;;  %v879_v50 = vsel %vm812_vm1, %v811_v29, 0.0  ;;  %v4199_v26 = vld [vmem:[#allocation150_spill] sm:$0xff]  ;;  %v4201_v52 = vld [vmem:[#allocation152_spill] sm:$0xff] }
  0xf5   :  { %v846_v9 = vadd.f32 %v845_v25, %v844_v63  ;;  %v859_v49 = vadd.f32 %v858_v51, %v857_v45  ;;  %v885_v1 = vrot.slane %v829_v34, 1  ;;  %v2930_v55 = vmul.f32 %v4190_v30, %v4190_v30  ;;  %v4200_v51 = vld [vmem:[#allocation151_spill] sm:$0xff]  ;;  %v4202_v45 = vld [vmem:[#allocation153_spill] sm:$0xff] }
  0xf6   :  { %v874_v16 = vadd.f32 %v873_v61, %v872_v2  ;;  %v2934_v53 = vmul.f32 %v4191_v20, %v4191_v20  ;;  %v2938_v54 = vmul.f32 %v4192_v10, %v4192_v10  ;;  %v2942_v29 = vmul.f32 %v4193_v27, %v4193_v27  ;;  %v4204_v2 = vld [vmem:[#allocation155_spill] sm:$0xff]  ;;  %v775_v20 = vld [vmem:[#allocation2 + $0x18] sm:$0x7f]  ;;  %v4213_v27 = vld [vmem:[#allocation161_spill] sm:$0xff] }
  0xf7   :  { %v861_v36 = vadd.f32 %v860_v22, %v859_v49  ;;  %v886_v32 = vrot.slane %v846_v9, 1  ;;  %v893_v56 = vadd.f32 %v885_v1, %v772_v33  ;;  %v2946_v37 = vmul.f32 %v4194_v4, %v4194_v4  ;;  %v4203_v33 = vld [vmem:[#allocation154_spill] sm:$0xff]  ;;  %v4205_v9 = vld [vmem:[#allocation156_spill] sm:$0xff]  ;;  %v4206_v1 = vld [vmem:[#allocation157_spill] sm:$0xff] }
  0xf8   :  { %v876_v48 = vadd.f32 %v875_v13, %v874_v16  ;;  %v2950_v41 = vmul.f32 %v4195_v28, %v4195_v28  ;;  %v2954_v5 = vmul.f32 %v4196_v39, %v4196_v39  ;;  %v2958_v8 = vmul.f32 %v4197_v23, %v4197_v23  ;;  %v4207_v16 = vld [vmem:[#allocation158_spill] sm:$0xff]  ;;  %v4219_v23 = vld [vmem:[#allocation164_spill] sm:$0xff] }
  0xf9   :  { %v863_v31 = vadd.f32 %v862_v46, %v861_v36  ;;  %v894_v47 = vadd.f32 %v886_v32, %v773_v42  ;;  %897 = vst [vmem:[#allocation2] sm:$0x7f] %v893_v56  ;;  %v2962_v57 = vmul.f32 %v4198_v17, %v4198_v17  ;;  %v2966_v25 = vmul.f32 %v4199_v26, %v4199_v26  ;;  %v4209_v36 = vld [vmem:[#allocation159_spill] sm:$0xff]  ;;  %v4211_v56 = vld [vmem:[#allocation160_spill] sm:$0xff]  ;;  %v4215_v28 = vld [vmem:[#allocation162_spill] sm:$0xff] }
  0xfa   :  { %v878_v43 = vadd.f32 %v877_v21, %v876_v48  ;;  %v2970_v22 = vmul.f32 %v4200_v51, %v4200_v51  ;;  %v2974_v34 = vmul.f32 %v4201_v52, %v4201_v52  ;;  %v2978_v61 = vmul.f32 %v4202_v45, %v4202_v45  ;;  %v4223_v26 = vld [vmem:[#allocation166_spill] sm:$0xff]  ;;  %v4225_v52 = vld [vmem:[#allocation167_spill] sm:$0xff]  ;;  %v4227_v45 = vld [vmem:[#allocation168_spill] sm:$0xff] }
  0xfb   :  { %v887_v63 = vrot.slane %v863_v31, 1  ;;  %898 = vst [vmem:[#allocation2 + $0x8] sm:$0x7f] %v894_v47  ;;  %v2982_v46 = vmul.f32 %v4203_v33, %v4203_v33  ;;  %v2986_v13 = vmul.f32 %v4204_v2, %v4204_v2  ;;  %v2990_v49 = vmul.f32 %v4205_v9, %v4205_v9  ;;  %v4217_v31 = vld [vmem:[#allocation163_spill] sm:$0xff] }
  0xfc   :  { %v880_v21 = vadd.f32 %v879_v50, %v878_v43  ;;  %v2994_v42 = vmul.f32 %v4206_v1, %v4206_v1  ;;  %v2998_v30 = vmul.f32 %v4207_v16, %v4207_v16  ;;  %v3002_v32 = vmul.f32 %v4209_v36, %v4209_v36  ;;  %v4231_v1 = vld [vmem:[#allocation170_spill] sm:$0xff] }
  0xfd   :  { %v895_v10 = vadd.f32 %v887_v63, %v774_v44  ;;  %v3006_v50 = vmul.f32 %v4211_v56, %v4211_v56  ;;  %v3010_v48 = vmul.f32 %v4213_v27, %v4213_v27  ;;  %v3014_v39 = vmul.f32 %v4215_v28, %v4215_v28  ;;  %v4221_v44 = vld [vmem:[#allocation165_spill] sm:$0xff]  ;;  %v4235_v56 = vld [vmem:[#allocation172_spill] sm:$0xff]  ;;  %v4237_v28 = vld [vmem:[#allocation106_spill] sm:$0xff] }
  0xfe   :  { %4208 = vst [vmem:[#allocation32_spill] sm:$0xff] %v2998_v30  ;;  %4210 = vst [vmem:[#allocation80_spill] sm:$0xff] %v3002_v32  ;;  %v888_v4 = vrot.slane %v880_v21, 1  ;;  %v3018_v47 = vmul.f32 %v4217_v31, %v4217_v31  ;;  %v3022_v17 = vmul.f32 %v4219_v23, %v4219_v23  ;;  %v3026_v43 = vmul.f32 %v4221_v44, %v4221_v44  ;;  %v4229_v21 = vld [vmem:[#allocation169_spill] sm:$0xff] }
  0xff   :  { %4212 = vst [vmem:[#allocation36_spill] sm:$0xff] %v3006_v50  ;;  %4214 = vst [vmem:[#allocation88_spill] sm:$0xff] %v3010_v48  ;;  %v3030_v51 = vmul.f32 %v4223_v26, %v4223_v26  ;;  %v3034_v63 = vmul.f32 %v4225_v52, %v4225_v52  ;;  %v3038_v33 = vmul.f32 %v4227_v45, %v4227_v45  ;;  %v4241_v23 = vld [vmem:[#allocation9_spill] sm:$0xff]  ;;  %v4261_v48 = vld [vmem:[#allocation79_spill] sm:$0xff] }
 0x100   :  { %4216 = vst [vmem:[#allocation41_spill] sm:$0xff] %v3014_v39  ;;  %4218 = vst [vmem:[#allocation53_spill] sm:$0xff] %v3018_v47  ;;  %v896_v2 = vadd.f32 %v888_v4, %v775_v20  ;;  %v3042_v9 = vmul.f32 %v4229_v21, %v4229_v21  ;;  %v3046_v16 = vmul.f32 %v4231_v1, %v4231_v1  ;;  %v4239_v20 = vld [vmem:[#allocation13_spill] sm:$0xff]  ;;  %v4259_v47 = vld [vmem:[#allocation78_spill] sm:$0xff] }
 0x101   :  { %4220 = vst [vmem:[#allocation42_spill] sm:$0xff] %v3022_v17  ;;  %899 = vst [vmem:[#allocation2 + $0x10] sm:$0x7f] %v895_v10  ;;  %v4233_v10 = vld [vmem:[#allocation171_spill] sm:$0xff]  ;;  %v3054_v27 = vmul.f32 %v4235_v56, %v4235_v56  ;;  %v3058_v31 = vmul.f32 %v4237_v28, %v4237_v28  ;;  %v3062_v4 = vmul.f32 %v4239_v20, %v4239_v20  ;;  %v4243_v56 = vld [vmem:[#allocation25_spill] sm:$0xff] }
 0x102   :  { %4222 = vst [vmem:[#allocation54_spill] sm:$0xff] %v3026_v43  ;;  %4224 = vst [vmem:[#allocation46_spill] sm:$0xff] %v3030_v51  ;;  %v3050_v36 = vmul.f32 %v4233_v10, %v4233_v10  ;;  %v3066_v44 = vmul.f32 %v4241_v23, %v4241_v23  ;;  %v938_v26 = vmul.f32 %v2616_v0, %v2616_v0  ;;  %v4244_v28 = vld [vmem:[#allocation10_spill] sm:$0xff]  ;;  %v4246_v23 = vld [vmem:[#allocation11_spill] sm:$0xff] }
 0x103   :  { %4226 = vst [vmem:[#allocation55_spill] sm:$0xff] %v3034_v63  ;;  %4228 = vst [vmem:[#allocation47_spill] sm:$0xff] %v3038_v33  ;;  %v939_v52 = vmul.f32 %v2623_v60, %v2623_v60  ;;  %v940_v45 = vmul.f32 %v2630_v7, %v2630_v7  ;;  %v941_v21 = vmul.f32 %v2637_v6, %v2637_v6  ;;  %v4245_v20 = vld [vmem:[#allocation30_spill] sm:$0xff]  ;;  %v4254_v33 = vld [vmem:[#allocation17_spill] sm:$0xff] }
 0x104   :  { %4230 = vst [vmem:[#allocation56_spill] sm:$0xff] %v3042_v9  ;;  %4232 = vst [vmem:[#allocation60_spill] sm:$0xff] %v3046_v16  ;;  %v942_v1 = vmul.f32 %v2642_v40, %v2642_v40  ;;  %v943_v10 = vmul.f32 %v2647_v11, %v2647_v11  ;;  %v945_v0 = vmul.f32 %v2657_v58, %v2657_v58  ;;  %v4252_v16 = vld [vmem:[#allocation16_spill] sm:$0xff]  ;;  %v4255_v63 = vld [vmem:[#allocation45_spill] sm:$0xff] }
 0x105   :  { %4234 = vst [vmem:[#allocation119_spill] sm:$0xff] %v3050_v36  ;;  %4236 = vst [vmem:[#allocation64_spill] sm:$0xff] %v3054_v27  ;;  %v946_v60 = vmul.f32 %v2662_v18, %v2662_v18  ;;  %v947_v7 = vmul.f32 %v2667_v12, %v2667_v12  ;;  %v948_v6 = vmul.f32 %v2672_v62, %v2672_v62  ;;  %v4250_v27 = vld [vmem:[#allocation14_spill] sm:$0xff]  ;;  %v4251_v36 = vld [vmem:[#allocation43_spill] sm:$0xff] }
 0x106   :  { %4238 = vst [vmem:[#allocation120_spill] sm:$0xff] %v3058_v31  ;;  %4240 = vst [vmem:[#allocation65_spill] sm:$0xff] %v3062_v4  ;;  %v949_v40 = vmul.f32 %v2677_v24, %v2677_v24  ;;  %v950_v11 = vmul.f32 %v2682_v38, %v2682_v38  ;;  %v952_v58 = vmul.f32 %v2692_v15, %v2692_v15  ;;  %v4248_v4 = vld [vmem:[#allocation12_spill] sm:$0xff]  ;;  %v4249_v31 = vld [vmem:[#allocation35_spill] sm:$0xff] }
 0x107   :  { %4242 = vst [vmem:[#allocation121_spill] sm:$0xff] %v3066_v44  ;;  %900 = vst [vmem:[#allocation2 + $0x18] sm:$0x7f] %v896_v2  ;;  %v944_v2 = vmul.f32 %v2652_v14, %v2652_v14  ;;  %v951_v14 = vmul.f32 %v2687_v35, %v2687_v35  ;;  %v953_v18 = vmul.f32 %v2697_v59, %v2697_v59  ;;  %v4247_v44 = vld [vmem:[#allocation34_spill] sm:$0xff]  ;;  %v4253_v9 = vld [vmem:[#allocation44_spill] sm:$0xff] }
 0x108   :  { %v954_v12 = vmul.f32 %v2702_v19, %v2702_v19  ;;  %v955_v62 = vmul.f32 %v4243_v56, %v4243_v56  ;;  %v956_v24 = vmul.f32 %v4244_v28, %v4244_v28  ;;  %v957_v38 = vmul.f32 %v4245_v20, %v4245_v20  ;;  %v4256_v51 = vld [vmem:[#allocation20_spill] sm:$0xff]  ;;  %v4257_v43 = vld [vmem:[#allocation50_spill] sm:$0xff]  ;;  %v4258_v17 = vld [vmem:[#allocation27_spill] sm:$0xff] }
 0x109   :  { %v958_v35 = vmul.f32 %v4246_v23, %v4246_v23  ;;  %v959_v15 = vmul.f32 %v4247_v44, %v4247_v44  ;;  %v960_v59 = vmul.f32 %v4248_v4, %v4248_v4  ;;  %v961_v19 = vmul.f32 %v4249_v31, %v4249_v31  ;;  %v4260_v39 = vld [vmem:[#allocation31_spill] sm:$0xff] }
 0x10a   :  { %v962_v56 = vmul.f32 %v4250_v27, %v4250_v27  ;;  %v963_v28 = vmul.f32 %v4251_v36, %v4251_v36  ;;  %v964_v20 = vmul.f32 %v4252_v16, %v4252_v16  ;;  %v965_v23 = vmul.f32 %v4253_v9, %v4253_v9 }
 0x10b   :  { %v966_v44 = vmul.f32 %v4254_v33, %v4254_v33  ;;  %v967_v4 = vmul.f32 %v4255_v63, %v4255_v63  ;;  %v968_v31 = vmul.f32 %v4256_v51, %v4256_v51  ;;  %v969_v27 = vmul.f32 %v4257_v43, %v4257_v43 }
 0x10c   :  { %v970_v36 = vmul.f32 %v4258_v17, %v4258_v17  ;;  %v971_v16 = vmul.f32 %v4259_v47, %v4259_v47  ;;  %v972_v9 = vmul.f32 %v4260_v39, %v4260_v39  ;;  %v3140_v33 = vmul.f32 %v4261_v48, %v4261_v48 }
 0x10d   :  { %v974_v63 = vadd.f32 %v938_v26, %v2897_v3  ;;  %v975_v51 = vadd.f32 %v939_v52, %v2930_v55  ;;  %v976_v50 = vadd.f32 %v940_v45, %v2934_v53  ;;  %v977_v43 = vadd.f32 %v941_v21, %v2938_v54  ;;  %v4262_v26 = vld [vmem:[#allocation32_spill] sm:$0xff] }
 0x10e   :  { %v978_v17 = vadd.f32 %v942_v1, %v2942_v29  ;;  %v979_v32 = vadd.f32 %v943_v10, %v2946_v37  ;;  %v980_v47 = vadd.f32 %v944_v2, %v2950_v41  ;;  %v981_v39 = vadd.f32 %v945_v0, %v2954_v5  ;;  %v4263_v52 = vld [vmem:[#allocation80_spill] sm:$0xff]  ;;  %v4266_v1 = vld [vmem:[#allocation41_spill] sm:$0xff] }
 0x10f   :  { %v982_v30 = vadd.f32 %v946_v60, %v2958_v8  ;;  %v983_v48 = vadd.f32 %v947_v7, %v2962_v57  ;;  %v984_v3 = vadd.f32 %v948_v6, %v2966_v25  ;;  %v985_v55 = vadd.f32 %v949_v40, %v2970_v22  ;;  %v4264_v45 = vld [vmem:[#allocation36_spill] sm:$0xff]  ;;  %v4267_v10 = vld [vmem:[#allocation53_spill] sm:$0xff] }
 0x110   :  { %v986_v53 = vadd.f32 %v950_v11, %v2974_v34  ;;  %v987_v54 = vadd.f32 %v951_v14, %v2978_v61  ;;  %v988_v29 = vadd.f32 %v952_v58, %v2982_v46  ;;  %v989_v37 = vadd.f32 %v953_v18, %v2986_v13  ;;  %v4265_v21 = vld [vmem:[#allocation88_spill] sm:$0xff]  ;;  %v4268_v46 = vld [vmem:[#allocation42_spill] sm:$0xff]  ;;  %v4272_v14 = vld [vmem:[#allocation47_spill] sm:$0xff] }
 0x111   :  { %v990_v41 = vadd.f32 %v954_v12, %v2990_v49  ;;  %v991_v5 = vadd.f32 %v955_v62, %v2994_v42  ;;  %v992_v8 = vadd.f32 %v956_v24, %v4262_v26  ;;  %v993_v57 = vadd.f32 %v957_v38, %v4263_v52  ;;  %v4269_v13 = vld [vmem:[#allocation54_spill] sm:$0xff]  ;;  %v4271_v42 = vld [vmem:[#allocation55_spill] sm:$0xff]  ;;  %v4273_v18 = vld [vmem:[#allocation56_spill] sm:$0xff] }
 0x112   :  { %v994_v25 = vadd.f32 %v958_v35, %v4264_v45  ;;  %v995_v22 = vadd.f32 %v959_v15, %v4265_v21  ;;  %v996_v34 = vadd.f32 %v960_v59, %v4266_v1  ;;  %v3166_v61 = vadd.f32 %v961_v19, %v4267_v10  ;;  %v4270_v49 = vld [vmem:[#allocation46_spill] sm:$0xff]  ;;  %v4274_v62 = vld [vmem:[#allocation60_spill] sm:$0xff]  ;;  %v4275_v35 = vld [vmem:[#allocation119_spill] sm:$0xff] }
 0x113   :  { %v998_v2 = vadd.f32 %v962_v56, %v4268_v46  ;;  %v999_v0 = vadd.f32 %v963_v28, %v4269_v13  ;;  %v1000_v60 = vadd.f32 %v964_v20, %v4270_v49  ;;  %v3172_v7 = vadd.f32 %v965_v23, %v4271_v42  ;;  %v4276_v28 = vld [vmem:[#allocation64_spill] sm:$0xff] }
 0x114   :  { %v1011_v6 = vsel %vm1010_vm2, %v974_v63, 0.0  ;;  %v1012_v40 = vsel %vm1010_vm2, %v978_v17, 0.0  ;;  %v1014_v11 = vsel %vm1010_vm2, %v982_v30, 0.0  ;;  %v1002_v58 = vadd.f32 %v966_v44, %v4272_v14  ;;  %v4277_v63 = vld [vmem:[#allocation120_spill] sm:$0xff]  ;;  %v4278_v17 = vld [vmem:[#allocation65_spill] sm:$0xff] }
 0x115   :  { %v1003_v12 = vadd.f32 %v967_v4, %v4273_v18  ;;  %v1004_v24 = vadd.f32 %v968_v31, %v4274_v62  ;;  %v1013_v38 = vadd.f32 %v1012_v40, %v1011_v6  ;;  %v3181_v15 = vadd.f32 %v969_v27, %v4275_v35 }
 0x116   :  { %v1016_v59 = vsel %vm1010_vm2, %v986_v53, 0.0  ;;  %v1028_v19 = vsel %vm1010_vm2, %v975_v51, 0.0  ;;  %v1029_v56 = vsel %vm1010_vm2, %v979_v32, 0.0  ;;  %v1006_v20 = vadd.f32 %v970_v36, %v4276_v28 }
 0x117   :  { %v1015_v23 = vadd.f32 %v1014_v11, %v1013_v38  ;;  %v1030_v30 = vadd.f32 %v1029_v56, %v1028_v19  ;;  %v1031_v44 = vsel %vm1010_vm2, %v983_v48, 0.0  ;;  %v1007_v4 = vadd.f32 %v971_v16, %v4277_v63 }
 0x118   :  { %v1008_v31 = vadd.f32 %v972_v9, %v4278_v17  ;;  %v1018_v26 = vsel %vm1010_vm2, %v990_v41, 0.0  ;;  %v1033_v27 = vsel %vm1010_vm2, %v987_v54, 0.0  ;;  %v1020_v53 = vsel %vm1010_vm2, %v994_v25, 0.0 }
 0x119   :  { %v1017_v52 = vadd.f32 %v1016_v59, %v1015_v23  ;;  %v1032_v51 = vadd.f32 %v1031_v44, %v1030_v30  ;;  %v1045_v32 = vsel %vm1010_vm2, %v976_v50, 0.0  ;;  %v1022_v36 = vsel %vm1010_vm2, %v998_v2, 0.0 }
 0x11a   :  { %v1035_v45 = vsel %vm1010_vm2, %v991_v5, 0.0  ;;  %v1046_v48 = vsel %vm1010_vm2, %v980_v47, 0.0  ;;  %v1048_v16 = vsel %vm1010_vm2, %v984_v3, 0.0  ;;  %v1024_v9 = vsel %vm1010_vm2, %v1002_v58, 0.0 }
 0x11b   :  { %v1019_v21 = vadd.f32 %v1018_v26, %v1017_v52  ;;  %v1034_v41 = vadd.f32 %v1033_v27, %v1032_v51  ;;  %v1047_v1 = vadd.f32 %v1046_v48, %v1045_v32  ;;  %v1026_v54 = vsel %vm1010_vm2, %v1006_v20, 0.0 }
 0x11c   :  { %v1037_v25 = vsel %vm1010_vm2, %v995_v22, 0.0  ;;  %v1050_v10 = vsel %vm1010_vm2, %v988_v29, 0.0  ;;  %v1062_v50 = vsel %vm1010_vm2, %v977_v43, 0.0  ;;  %v1063_v47 = vsel %vm1010_vm2, %v981_v39, 0.0 }
 0x11d   :  { %v1021_v46 = vadd.f32 %v1020_v53, %v1019_v21  ;;  %v1036_v2 = vadd.f32 %v1035_v45, %v1034_v41  ;;  %v1049_v5 = vadd.f32 %v1048_v16, %v1047_v1  ;;  %v1039_v3 = vsel %vm1010_vm2, %v999_v0, 0.0  ;;  %v901_v16 = vld [vmem:[#allocation2] ss:$8 sm:$0xf] }
 0x11e   :  { %v1052_v13 = vsel %vm1010_vm2, %v992_v8, 0.0  ;;  %v1064_v49 = vadd.f32 %v1063_v47, %v1062_v50  ;;  %v1065_v42 = vsel %vm1010_vm2, %v985_v55, 0.0  ;;  %v1067_v22 = vsel %vm1010_vm2, %v989_v37, 0.0 }
 0x11f   :  { %v1023_v6 = vadd.f32 %v1022_v36, %v1021_v46  ;;  %v1038_v40 = vadd.f32 %v1037_v25, %v1036_v2  ;;  %v1051_v11 = vadd.f32 %v1050_v10, %v1049_v5  ;;  %v1041_v29 = vsel %vm1010_vm2, %v1003_v12, 0.0 }
 0x120   :  { %v1054_v43 = vsel %vm1010_vm2, %v996_v34, 0.0  ;;  %v1066_v14 = vadd.f32 %v1065_v42, %v1064_v49  ;;  %v1069_v58 = vsel %vm1010_vm2, %v993_v57, 0.0  ;;  %v1056_v8 = vsel %vm1010_vm2, %v1000_v60, 0.0  ;;  %v4279_v57 = vld [vmem:[#allocation121_spill] sm:$0xff] }
 0x121   :  { %v1025_v39 = vadd.f32 %v1024_v9, %v1023_v6  ;;  %v1040_v18 = vadd.f32 %v1039_v3, %v1038_v40  ;;  %v1053_v0 = vadd.f32 %v1052_v13, %v1051_v11  ;;  %v1203_v38 = vmov 1966171168  }
 0x122   :  { %v1068_v62 = vadd.f32 %v1067_v22, %v1066_v14  ;;  %v1086_v55 = vunpack.c.l.s4 %v1203_v38  ;;  %v1088_v35 = vlaneseq  ;;  %v1043_v19 = vsel %vm1010_vm2, %v1007_v4, 0.0 }
 0x123   :  { %v1042_v59 = vadd.f32 %v1041_v29, %v1040_v18  ;;  %v1055_v37 = vadd.f32 %v1054_v43, %v1053_v0  ;;  %v1071_v12 = vsel %vm1010_vm2, %v3166_v61, 0.0  ;;  %v1058_v34 = vsel %vm1010_vm2, %v1004_v24, 0.0 }
 0x124   :  { %v1070_v56 = vadd.f32 %v1069_v58, %v1068_v62  ;;  %v1009_v28 = vadd.f32 %v3140_v33, %v4279_v57  ;;  %v1027_v20 = vadd.f32 %v1026_v54, %v1025_v39  ;;  %v1073_v60 = vsel %vm1010_vm2, %v3172_v7, 0.0 }
 0x125   :  { %v1057_v23 = vadd.f32 %v1056_v8, %v1055_v37  ;;  %v1044_v30 = vadd.f32 %v1043_v19, %v1042_v59  ;;  %v1087_v63 = vunpack.c.0.s8 %v1086_v55  ;;  %v1089_v17 = vshrl.u32 %v1088_v35, 7 }
 0x126   :  { %v1072_v44 = vadd.f32 %v1071_v12, %v1070_v56  ;;  %v1060_v26 = vsel %vm1010_vm2, %v1008_v31, 0.0  ;;  %v1075_v61 = vsel %vm1010_vm2, %v3181_v15, 0.0  ;;  %v1077_v27 = vsel %vm1010_vm2, %v1009_v28, 0.0 }
 0x127   :  { %v1059_v4 = vadd.f32 %v1058_v34, %v1057_v23  ;;  %v1083_v53 = vcombine.low %v1027_v20, %v1044_v30  ;;  %v1090_v51 = vsub.s32 %v1087_v63, %v1089_v17  ;;  %vm1111_vm3 = vcmp.lt.s32.totalorder %v1088_v35, 512 }
 0x128   :  { %v1074_v24 = vadd.f32 %v1073_v60, %v1072_v44 }
 0x129   :  { %v1061_v52 = vadd.f32 %v1060_v26, %v1059_v4  ;;  %v1091_v7 = vrot.slane %v1083_v53, %v1090_v51 }
 0x12a   :  { %v1076_v33 = vadd.f32 %v1075_v61, %v1074_v24 }
 0x12c   :  { %v1078_v32 = vadd.f32 %v1077_v27, %v1076_v33 }
 0x12e   :  { %v1084_v36 = vcombine.low %v1061_v52, %v1078_v32 }
 0x130   :  { %v1098_v45 = vrot.slane %v1084_v36, %v1090_v51 }
 0x132   :  { %v1099_v48 = vcombine.low %v1091_v7, %v1098_v45 }
 0x134   :  { %v1106_v21 = vrot.slane %v1099_v48, %v1090_v51 }
 0x136   :  { %v1108_v9 = vadd.f32 %v1106_v21, %v901_v16 }
 0x138   :  { %1113 = vst.msk [vmem:[#allocation2] ss:$8 sm:$0xf] %vm1111_vm3, %v1108_v9 }
 0x13f   :  { %v1118_v31 = vld [vmem:[#allocation2] sm:$0x7f]  ;;  %v1119_v41 = vld [vmem:[#allocation2 + $0x8] sm:$0x7f]  ;;  %v1120_v15 = vld [vmem:[#allocation2 + $0x10] sm:$0x7f] }
 0x140   :  { %v1121_v1 = vld [vmem:[#allocation2 + $0x18] sm:$0x7f]  ;;  %v1122_v54 = vsel %vm483_vm0, %v1118_v31, 0.0  ;;  %v1123_v25 = vsel %vm483_vm0, %v1119_v41, 0.0  ;;  %v1125_v10 = vsel %vm483_vm0, %v1120_v15, 0.0 }
 0x141   :  { %v1124_v50 = vadd.f32 %v1123_v25, %v1122_v54  ;;  %v1127_v46 = vsel %vm483_vm0, %v1121_v1, 0.0 }
 0x143   :  { %v1126_v2 = vadd.f32 %v1125_v10, %v1124_v50 }
 0x145   :  { %v1128_v5 = vadd.f32 %v1127_v46, %v1126_v2 }
 0x147   :  { %1129 = vadd.xlane.f32.xlu0 %v1128_v5 }
 0x1d4   :  { %v1130_v47 = vpop.xlane.xlu0 %1129 }
 0x1d5   :  { %v1131_v3 = vrot.slane %v1130_v47, 4 }
 0x1d7   :  { %v1132_v13 = vadd.f32 %v1131_v3, %v1130_v47 }
 0x1d9   :  { %v1133_v49 = vrot.slane %v1132_v13, 2 }
 0x1db   :  { %v1134_v42 = vadd.f32 %v1133_v49, %v1132_v13 }
 0x1dd   :  { %v1135_v6 = vrot.slane %v1134_v42, 1 }
 0x1df   :  { %v1136_v40 = vadd.f32 %v1135_v6, %v1134_v42 }
 0x1e1   :  { %1155 = vpush %v1136_v40 }
 0x212   :  { %s1156_s0 = spop %1155 }
 0x213   :  { %s1138_s20 = smul.f32 1.2056327e-05, %s1156_s0 }
 0x215   :  { %1140 = sst [smem:[#allocation6]] %s1138_s20 }
 0x216   :  { %1194 = shalt.err (!%p1191_p10)
}
 0x217   :  { %s1204_s28 = smov [#allocation6]  }
 0x218   :  { %1148 = dma.smem_to_hbm %s1204_s28, 16, %s3241_s1, [#allocation5]  }
 0x219   :  { %1197 = dma.done.wait [#allocation5], 16  }
 0x21a   :  { %1198 = vsyncadd [#allocation5], 4294967280 }
 0x21b   :  { %1152 = sfence }
 0x21c   :  { %1153 = vsyncpa [#allocation4], 1 }
 0x21d   :  { %1154 = vsyncpa [#allocation5], 1 }

</bundles_post_ra>
